<compile_context>
chip_gen: v5e
topology: v5e:2x2
jax: 0.10.0
libtpu: 0.0.40
codegen_flags: <defaults>
</compile_context>

<pallas_src>
import jax
import jax.numpy as jnp
from jax import lax
from jax.experimental import pallas as pl
from jax.experimental.pallas import tpu as pltpu

# ---- model hyper-parameters (from the PyTorch module) ----
N_EMBD = 128
N_HEAD = 4
HEAD_SIZE = N_EMBD // N_HEAD   # 32
BLOCK_SIZE = 256               # max context of the PyTorch tril buffer
LN_EPS = 1e-5
NEG_BIG = -1e30                # finite "masked" score (avoids -inf NaN pitfalls)


def _layernorm(x, w, b):
    # x: (T, C) f32, w/b: (1, C) f32 (f32 on purpose: v5e has no bf16 VPU/EUP)
    mu = jnp.mean(x, axis=-1, keepdims=True)
    xc = x - mu
    var = jnp.mean(xc * xc, axis=-1, keepdims=True)
    return xc * lax.rsqrt(var + LN_EPS) * w + b


# ----------------------------------------------------------------------------
# Fused transformer-block kernel. One grid step == one batch element (T, C).
# ----------------------------------------------------------------------------
def block_kernel(x_ref, wqkv_ref, wo_ref, w1_ref, w2_ref, vec_ref, b1_ref,
                 out_ref):
    C, H, HS = N_EMBD, N_HEAD, HEAD_SIZE
    T = x_ref.shape[0]

    x = x_ref[...]                                   # (T, C) f32
    vecs = vec_ref[...]                              # (8, C) f32 packed small params
    ln1_w, ln1_b = vecs[0:1], vecs[1:2]
    bo = vecs[2:3]
    ln2_w, ln2_b = vecs[3:4], vecs[4:5]
    b2 = vecs[5:6]

    # ---- pre-LN multi-head causal self-attention ----
    h = _layernorm(x, ln1_w, ln1_b)                  # (T, C) f32
    h_bf = h.astype(jnp.bfloat16)

    # Fused QKV projection, lane-dense: (T, C) @ (C, 3C) -> (T, 3C).
    # Single bf16 downcast of the whole result (f32 MXU accumulation kept).
    qkv = jnp.dot(h_bf, wqkv_ref[...],
                  preferred_element_type=jnp.float32).astype(jnp.bfloat16)

    # Causal mask for this batch element (diagonal never masked).
    row = lax.broadcasted_iota(jnp.int32, (T, T), 0)
    col = lax.broadcasted_iota(jnp.int32, (T, T), 1)
    causal = col <= row

    scale = HS ** -0.5
    head_outs = []
    for hd in range(H):                              # static unroll over 4 heads
        q = qkv[:, hd * HS:(hd + 1) * HS]                        # (T, HS) bf16
        k = qkv[:, C + hd * HS:C + (hd + 1) * HS]                # (T, HS) bf16
        v = qkv[:, 2 * C + hd * HS:2 * C + (hd + 1) * HS]        # (T, HS) bf16

        # q @ k^T without an explicit transpose (trans_b contraction).
        s = lax.dot_general(
            q, k, dimension_numbers=(((1,), (1,)), ((), ())),
            preferred_element_type=jnp.float32) * scale          # (T, T) f32
        s = jnp.where(causal, s, NEG_BIG)

        m = jnp.max(s, axis=-1, keepdims=True)
        e = jnp.exp(s - m)                                       # unnormalized
        denom = jnp.sum(e, axis=-1, keepdims=True)               # (T, 1) f32

        # Deferred normalization: PV matmul first, then scale (T, HS) result.
        o = jnp.dot(e.astype(jnp.bfloat16), v,
                    preferred_element_type=jnp.float32)          # (T, HS) f32
        o = o * pl.reciprocal(denom, approx=True)
        head_outs.append(o)

    att = jnp.concatenate(head_outs, axis=-1).astype(jnp.bfloat16)  # (T, C)

    sa = jnp.dot(att, wo_ref[...],
                 preferred_element_type=jnp.float32) + bo           # (T, C) f32
    x = x + sa                                                      # residual 1

    # ---- pre-LN feed-forward ----
    h2 = _layernorm(x, ln2_w, ln2_b).astype(jnp.bfloat16)
    ff = jnp.dot(h2, w1_ref[...],
                 preferred_element_type=jnp.float32) + b1_ref[...]  # (T, 4C) f32
    ff = jnp.maximum(ff, 0.0).astype(jnp.bfloat16)                  # ReLU
    ff = jnp.dot(ff, w2_ref[...],
                 preferred_element_type=jnp.float32) + b2           # (T, C) f32
    out_ref[...] = x + ff                                           # residual 2


def transformer_block(x, params):
    B, T, C = x.shape
    if C != N_EMBD:
        raise ValueError(f"expected C == {N_EMBD}, got {C}")
    if T > BLOCK_SIZE:
        raise ValueError(f"T={T} exceeds block_size={BLOCK_SIZE}")
    if T % 8 != 0:
        raise ValueError("T must be a multiple of 8 (sublane tiling)")

    x2 = x.reshape(B * T, C).astype(jnp.float32)
    const = lambda shape: pl.BlockSpec(shape, lambda b: (0,) * len(shape))

    out = pl.pallas_call(
        block_kernel,
        out_shape=jax.ShapeDtypeStruct((B * T, C), jnp.float32),
        grid=(B,),
        in_specs=[
            pl.BlockSpec((T, C), lambda b: (b, 0)),     # x (per-batch tile)
            const((C, 3 * C)),                          # wqkv  (bf16)
            const((C, C)),                              # wo    (bf16)
            const((C, 4 * C)),                          # w1    (bf16)
            const((4 * C, C)),                          # w2    (bf16)
            const((8, C)),                              # packed LN/bias vectors
            const((1, 4 * C)),                          # b1
        ],
        out_specs=pl.BlockSpec((T, C), lambda b: (b, 0)),
        compiler_params=pltpu.CompilerParams(
            dimension_semantics=("parallel",)),         # v7x: shard over both TCs
    )(x2, params["wqkv"], params["wo"], params["w1"], params["w2"],
      params["vecs"], params["b1"])
    return out.reshape(B, T, C)


# ----------------------------------------------------------------------------
# parameter construction (math convention y = x @ W + b, i.e. W = W_pytorch.T)
# ----------------------------------------------------------------------------
def init_block_params(key):
    C = N_EMBD
    k = jax.random.split(key, 7)
    nrm = lambda kk, shape: 0.02 * jax.random.normal(kk, shape, jnp.float32)
    wqkv = nrm(k[0], (C, 3 * C))   # columns: [q_h0..q_h3 | k_h0..k_h3 | v_h0..v_h3]
    wo = nrm(k[1], (C, C))
    w1 = nrm(k[2], (C, 4 * C))
    w2 = nrm(k[3], (4 * C, C))
    bo = nrm(k[4], (C,))
    b1 = nrm(k[5], (4 * C,))
    b2 = nrm(k[6], (C,))
    ln1_w = jnp.ones((C,), jnp.float32)
    ln1_b = jnp.zeros((C,), jnp.float32)
    ln2_w = jnp.ones((C,), jnp.float32)
    ln2_b = jnp.zeros((C,), jnp.float32)
    zero = jnp.zeros((C,), jnp.float32)
    return {
        # bf16 matmul weights (MXU-native, half the DMA bytes)
        "wqkv": wqkv.astype(jnp.bfloat16),        # (C, 3C)
        "wo": wo.astype(jnp.bfloat16),            # (C, C)
        "w1": w1.astype(jnp.bfloat16),            # (C, 4C)
        "w2": w2.astype(jnp.bfloat16),            # (4C, C)
        # packed f32 vectors: rows = [ln1_w, ln1_b, bo, ln2_w, ln2_b, b2, 0, 0]
        "vecs": jnp.stack([ln1_w, ln1_b, bo, ln2_w, ln2_b, b2, zero, zero],
                          axis=0),                # (8, C)
        "b1": b1.reshape(1, 4 * C),               # (1, 4C) f32
    }


# ----------------------------------------------------------------------------
# pure-JAX reference (mirrors the PyTorch Block forward, dropout = identity)
# ----------------------------------------------------------------------------
def block_reference(x, params):
    B, T, C = x.shape
    H, HS = N_HEAD, HEAD_SIZE
    vecs = params["vecs"]
    ln1_w, ln1_b, bo, ln2_w, ln2_b, b2 = (vecs[i] for i in range(6))
    wqkv = params["wqkv"].astype(jnp.float32)        # (C, 3C)
    wo = params["wo"].astype(jnp.float32)
    w1 = params["w1"].astype(jnp.float32)
    w2 = params["w2"].astype(jnp.float32)
    b1 = params["b1"].astype(jnp.float32)[0]

    def ln(z, w, b):
        mu = z.mean(-1, keepdims=True)
        var = ((z - mu) ** 2).mean(-1, keepdims=True)
        return (z - mu) * lax.rsqrt(var + LN_EPS) * w + b

    h = ln(x, ln1_w, ln1_b)
    qkv = h @ wqkv
    q, k, v = qkv[..., :C], qkv[..., C:2 * C], qkv[..., 2 * C:]
    q = q.reshape(B, T, H, HS).transpose(0, 2, 1, 3)
    k = k.reshape(B, T, H, HS).transpose(0, 2, 1, 3)
    v = v.reshape(B, T, H, HS).transpose(0, 2, 1, 3)
    s = jnp.einsum("bhtd,bhsd->bhts", q, k) * (HS ** -0.5)
    causal = jnp.tril(jnp.ones((T, T), bool))
    s = jnp.where(causal[None, None], s, -jnp.inf)
    p = jax.nn.softmax(s, axis=-1)
    att = jnp.einsum("bhts,bhsd->bhtd", p, v)
    att = att.transpose(0, 2, 1, 3).reshape(B, T, C)
    x = x + att @ wo + bo
    h2 = ln(x, ln2_w, ln2_b)
    ff = jnp.maximum(h2 @ w1 + b1, 0.0) @ w2 + b2
    return x + ff


if __name__ == "__main__":
    key = jax.random.PRNGKey(0)
    pkey, xkey = jax.random.split(key)
    params = init_block_params(pkey)

    B, T = 2, 16
    x = jax.random.normal(xkey, (B, T, N_EMBD), dtype=jnp.float32)

    out = jax.jit(transformer_block)(x, params)
    jax.block_until_ready(out)

    ref = block_reference(x, params)
    assert out.shape == (B, T, N_EMBD)
    assert bool(jnp.all(jnp.isfinite(out)))
    max_err = float(jnp.max(jnp.abs(out - ref)))
    assert max_err < 5e-2, f"max abs error vs reference: {max_err}"
    print("KERNEL_OK")
</pallas_src>

<mosaic_0001>
module attributes {stable_mosaic.version = 11 : i64} {
  func.func @block_kernel(%arg0: i32, %arg1: memref<16x128xf32, #tpu.memory_space<vmem>>, %arg2: memref<128x384xbf16, #tpu.memory_space<vmem>>, %arg3: memref<128x128xbf16, #tpu.memory_space<vmem>>, %arg4: memref<128x512xbf16, #tpu.memory_space<vmem>>, %arg5: memref<512x128xbf16, #tpu.memory_space<vmem>>, %arg6: memref<8x128xf32, #tpu.memory_space<vmem>>, %arg7: memref<1x512xf32, #tpu.memory_space<vmem>>, %arg8: memref<16x128xf32, #tpu.memory_space<vmem>>) attributes {dimension_semantics = [#tpu.dimension_semantics<parallel>], iteration_bounds = array<i64: 2>, scalar_prefetch = 0 : i64, scratch_operands = 0 : i64, tpu.core_type = #tpu.core_type<tc>, window_params = [{transform_indices = @transform_0, window_bounds = array<i64: 16, 128>}, {pipeline_mode = #tpu.pipeline_mode<synchronous>, transform_indices = @transform_1, window_bounds = array<i64: 128, 384>}, {pipeline_mode = #tpu.pipeline_mode<synchronous>, transform_indices = @transform_2, window_bounds = array<i64: 128, 128>}, {pipeline_mode = #tpu.pipeline_mode<synchronous>, transform_indices = @transform_3, window_bounds = array<i64: 128, 512>}, {pipeline_mode = #tpu.pipeline_mode<synchronous>, transform_indices = @transform_4, window_bounds = array<i64: 512, 128>}, {pipeline_mode = #tpu.pipeline_mode<synchronous>, transform_indices = @transform_5, window_bounds = array<i64: 8, 128>}, {pipeline_mode = #tpu.pipeline_mode<synchronous>, transform_indices = @transform_6, window_bounds = array<i64: 1, 512>}, {transform_indices = @transform_7, window_bounds = array<i64: 16, 128>}]} {
    %c0 = arith.constant 0 : index
    %c0_0 = arith.constant 0 : index
    %0 = vector.load %arg1[%c0, %c0_0] : memref<16x128xf32, #tpu.memory_space<vmem>>, vector<16x128xf32>
    %c0_1 = arith.constant 0 : index
    %c0_2 = arith.constant 0 : index
    %1 = vector.load %arg6[%c0_1, %c0_2] : memref<8x128xf32, #tpu.memory_space<vmem>>, vector<8x128xf32>
    %2 = vector.extract_strided_slice %1 {offsets = [0, 0], sizes = [1, 128], strides = [1, 1]} : vector<8x128xf32> to vector<1x128xf32>
    %3 = vector.extract_strided_slice %1 {offsets = [1, 0], sizes = [1, 128], strides = [1, 1]} : vector<8x128xf32> to vector<1x128xf32>
    %4 = vector.extract_strided_slice %1 {offsets = [2, 0], sizes = [1, 128], strides = [1, 1]} : vector<8x128xf32> to vector<1x128xf32>
    %5 = vector.extract_strided_slice %1 {offsets = [3, 0], sizes = [1, 128], strides = [1, 1]} : vector<8x128xf32> to vector<1x128xf32>
    %6 = vector.extract_strided_slice %1 {offsets = [4, 0], sizes = [1, 128], strides = [1, 1]} : vector<8x128xf32> to vector<1x128xf32>
    %7 = vector.extract_strided_slice %1 {offsets = [5, 0], sizes = [1, 128], strides = [1, 1]} : vector<8x128xf32> to vector<1x128xf32>
    %cst = arith.constant dense<0.000000e+00> : vector<16xf32>
    %8 = vector.multi_reduction <add>, %0, %cst [1] : vector<16x128xf32> to vector<16xf32>
    %9 = vector.shape_cast %8 : vector<16xf32> to vector<16x1xf32>
    %cst_3 = arith.constant 1.280000e+02 : f32
    %10 = vector.broadcast %cst_3 : f32 to vector<16x1xf32>
    %11 = arith.divf %9, %10 : vector<16x1xf32>
    %12 = vector.broadcast %11 : vector<16x1xf32> to vector<16x128xf32>
    %13 = arith.subf %0, %12 : vector<16x128xf32>
    %14 = arith.mulf %13, %13 : vector<16x128xf32>
    %cst_4 = arith.constant dense<0.000000e+00> : vector<16xf32>
    %15 = vector.multi_reduction <add>, %14, %cst_4 [1] : vector<16x128xf32> to vector<16xf32>
    %16 = vector.shape_cast %15 : vector<16xf32> to vector<16x1xf32>
    %cst_5 = arith.constant 1.280000e+02 : f32
    %17 = vector.broadcast %cst_5 : f32 to vector<16x1xf32>
    %18 = arith.divf %16, %17 : vector<16x1xf32>
    %cst_6 = arith.constant 9.99999974E-6 : f32
    %19 = vector.broadcast %cst_6 : f32 to vector<16x1xf32>
    %20 = arith.addf %18, %19 : vector<16x1xf32>
    %21 = math.rsqrt %20 : vector<16x1xf32>
    %22 = vector.broadcast %21 : vector<16x1xf32> to vector<16x128xf32>
    %23 = arith.mulf %13, %22 : vector<16x128xf32>
    %24 = vector.broadcast %2 : vector<1x128xf32> to vector<16x128xf32>
    %25 = arith.mulf %23, %24 : vector<16x128xf32>
    %26 = vector.broadcast %3 : vector<1x128xf32> to vector<16x128xf32>
    %27 = arith.addf %25, %26 : vector<16x128xf32>
    %28 = arith.truncf %27 : vector<16x128xf32> to vector<16x128xbf16>
    %c0_7 = arith.constant 0 : index
    %c0_8 = arith.constant 0 : index
    %29 = vector.load %arg2[%c0_7, %c0_8] : memref<128x384xbf16, #tpu.memory_space<vmem>>, vector<128x384xbf16>
    %cst_9 = arith.constant dense<0.000000e+00> : vector<16x384xf32>
    %30 = tpu.matmul %28, %29, %cst_9 {dimension_numbers = #tpu.dot_dimension_numbers<[1], [0], [0], [1], [0, 0, 1, 1], [], []>} : vector<16x128xbf16>, vector<128x384xbf16>, vector<16x384xf32> -> vector<16x384xf32>
    %31 = arith.truncf %30 : vector<16x384xf32> to vector<16x384xbf16>
    %32 = tpu.iota {dimensions = array<i32: 0>} : vector<16x16xi32>
    %33 = tpu.iota {dimensions = array<i32: 1>} : vector<16x16xi32>
    %34 = arith.cmpi sle, %33, %32 : vector<16x16xi32>
    %35 = vector.extract_strided_slice %31 {offsets = [0, 0], sizes = [16, 32], strides = [1, 1]} : vector<16x384xbf16> to vector<16x32xbf16>
    %36 = vector.extract_strided_slice %31 {offsets = [0, 128], sizes = [16, 32], strides = [1, 1]} : vector<16x384xbf16> to vector<16x32xbf16>
    %37 = vector.extract_strided_slice %31 {offsets = [0, 256], sizes = [16, 32], strides = [1, 1]} : vector<16x384xbf16> to vector<16x32xbf16>
    %cst_10 = arith.constant dense<0.000000e+00> : vector<16x16xf32>
    %38 = tpu.matmul %35, %36, %cst_10 {dimension_numbers = #tpu.dot_dimension_numbers<[1], [1], [0], [0], [0, 0, 1, 0], [], []>} : vector<16x32xbf16>, vector<16x32xbf16>, vector<16x16xf32> -> vector<16x16xf32>
    %cst_11 = arith.constant 0.176776692 : f32
    %39 = vector.broadcast %cst_11 : f32 to vector<16x16xf32>
    %40 = arith.mulf %38, %39 : vector<16x16xf32>
    %cst_12 = arith.constant -1.000000e+30 : f32
    %41 = vector.broadcast %cst_12 : f32 to vector<16x16xf32>
    %42 = arith.select %34, %40, %41 : vector<16x16xi1>, vector<16x16xf32>
    %cst_13 = arith.constant dense<0xFF800000> : vector<16xf32>
    %43 = vector.multi_reduction <maximumf>, %42, %cst_13 [1] : vector<16x16xf32> to vector<16xf32>
    %44 = vector.shape_cast %43 : vector<16xf32> to vector<16x1xf32>
    %45 = vector.broadcast %44 : vector<16x1xf32> to vector<16x16xf32>
    %46 = arith.subf %42, %45 : vector<16x16xf32>
    %47 = math.exp %46 : vector<16x16xf32>
    %cst_14 = arith.constant dense<0.000000e+00> : vector<16xf32>
    %48 = vector.multi_reduction <add>, %47, %cst_14 [1] : vector<16x16xf32> to vector<16xf32>
    %49 = vector.shape_cast %48 : vector<16xf32> to vector<16x1xf32>
    %50 = arith.truncf %47 : vector<16x16xf32> to vector<16x16xbf16>
    %cst_15 = arith.constant dense<0.000000e+00> : vector<16x32xf32>
    %51 = tpu.matmul %50, %37, %cst_15 {dimension_numbers = #tpu.dot_dimension_numbers<[1], [0], [0], [1], [0, 0, 1, 1], [], []>} : vector<16x16xbf16>, vector<16x32xbf16>, vector<16x32xf32> -> vector<16x32xf32>
    %52 = tpu.reciprocal %49 {approx = true} : vector<16x1xf32> -> vector<16x1xf32>
    %53 = vector.broadcast %52 : vector<16x1xf32> to vector<16x32xf32>
    %54 = arith.mulf %51, %53 : vector<16x32xf32>
    %55 = vector.extract_strided_slice %31 {offsets = [0, 32], sizes = [16, 32], strides = [1, 1]} : vector<16x384xbf16> to vector<16x32xbf16>
    %56 = vector.extract_strided_slice %31 {offsets = [0, 160], sizes = [16, 32], strides = [1, 1]} : vector<16x384xbf16> to vector<16x32xbf16>
    %57 = vector.extract_strided_slice %31 {offsets = [0, 288], sizes = [16, 32], strides = [1, 1]} : vector<16x384xbf16> to vector<16x32xbf16>
    %cst_16 = arith.constant dense<0.000000e+00> : vector<16x16xf32>
    %58 = tpu.matmul %55, %56, %cst_16 {dimension_numbers = #tpu.dot_dimension_numbers<[1], [1], [0], [0], [0, 0, 1, 0], [], []>} : vector<16x32xbf16>, vector<16x32xbf16>, vector<16x16xf32> -> vector<16x16xf32>
    %cst_17 = arith.constant 0.176776692 : f32
    %59 = vector.broadcast %cst_17 : f32 to vector<16x16xf32>
    %60 = arith.mulf %58, %59 : vector<16x16xf32>
    %cst_18 = arith.constant -1.000000e+30 : f32
    %61 = vector.broadcast %cst_18 : f32 to vector<16x16xf32>
    %62 = arith.select %34, %60, %61 : vector<16x16xi1>, vector<16x16xf32>
    %cst_19 = arith.constant dense<0xFF800000> : vector<16xf32>
    %63 = vector.multi_reduction <maximumf>, %62, %cst_19 [1] : vector<16x16xf32> to vector<16xf32>
    %64 = vector.shape_cast %63 : vector<16xf32> to vector<16x1xf32>
    %65 = vector.broadcast %64 : vector<16x1xf32> to vector<16x16xf32>
    %66 = arith.subf %62, %65 : vector<16x16xf32>
    %67 = math.exp %66 : vector<16x16xf32>
    %cst_20 = arith.constant dense<0.000000e+00> : vector<16xf32>
    %68 = vector.multi_reduction <add>, %67, %cst_20 [1] : vector<16x16xf32> to vector<16xf32>
    %69 = vector.shape_cast %68 : vector<16xf32> to vector<16x1xf32>
    %70 = arith.truncf %67 : vector<16x16xf32> to vector<16x16xbf16>
    %cst_21 = arith.constant dense<0.000000e+00> : vector<16x32xf32>
    %71 = tpu.matmul %70, %57, %cst_21 {dimension_numbers = #tpu.dot_dimension_numbers<[1], [0], [0], [1], [0, 0, 1, 1], [], []>} : vector<16x16xbf16>, vector<16x32xbf16>, vector<16x32xf32> -> vector<16x32xf32>
    %72 = tpu.reciprocal %69 {approx = true} : vector<16x1xf32> -> vector<16x1xf32>
    %73 = vector.broadcast %72 : vector<16x1xf32> to vector<16x32xf32>
    %74 = arith.mulf %71, %73 : vector<16x32xf32>
    %75 = vector.extract_strided_slice %31 {offsets = [0, 64], sizes = [16, 32], strides = [1, 1]} : vector<16x384xbf16> to vector<16x32xbf16>
    %76 = vector.extract_strided_slice %31 {offsets = [0, 192], sizes = [16, 32], strides = [1, 1]} : vector<16x384xbf16> to vector<16x32xbf16>
    %77 = vector.extract_strided_slice %31 {offsets = [0, 320], sizes = [16, 32], strides = [1, 1]} : vector<16x384xbf16> to vector<16x32xbf16>
    %cst_22 = arith.constant dense<0.000000e+00> : vector<16x16xf32>
    %78 = tpu.matmul %75, %76, %cst_22 {dimension_numbers = #tpu.dot_dimension_numbers<[1], [1], [0], [0], [0, 0, 1, 0], [], []>} : vector<16x32xbf16>, vector<16x32xbf16>, vector<16x16xf32> -> vector<16x16xf32>
    %cst_23 = arith.constant 0.176776692 : f32
    %79 = vector.broadcast %cst_23 : f32 to vector<16x16xf32>
    %80 = arith.mulf %78, %79 : vector<16x16xf32>
    %cst_24 = arith.constant -1.000000e+30 : f32
    %81 = vector.broadcast %cst_24 : f32 to vector<16x16xf32>
    %82 = arith.select %34, %80, %81 : vector<16x16xi1>, vector<16x16xf32>
    %cst_25 = arith.constant dense<0xFF800000> : vector<16xf32>
    %83 = vector.multi_reduction <maximumf>, %82, %cst_25 [1] : vector<16x16xf32> to vector<16xf32>
    %84 = vector.shape_cast %83 : vector<16xf32> to vector<16x1xf32>
    %85 = vector.broadcast %84 : vector<16x1xf32> to vector<16x16xf32>
    %86 = arith.subf %82, %85 : vector<16x16xf32>
    %87 = math.exp %86 : vector<16x16xf32>
    %cst_26 = arith.constant dense<0.000000e+00> : vector<16xf32>
    %88 = vector.multi_reduction <add>, %87, %cst_26 [1] : vector<16x16xf32> to vector<16xf32>
    %89 = vector.shape_cast %88 : vector<16xf32> to vector<16x1xf32>
    %90 = arith.truncf %87 : vector<16x16xf32> to vector<16x16xbf16>
    %cst_27 = arith.constant dense<0.000000e+00> : vector<16x32xf32>
    %91 = tpu.matmul %90, %77, %cst_27 {dimension_numbers = #tpu.dot_dimension_numbers<[1], [0], [0], [1], [0, 0, 1, 1], [], []>} : vector<16x16xbf16>, vector<16x32xbf16>, vector<16x32xf32> -> vector<16x32xf32>
    %92 = tpu.reciprocal %89 {approx = true} : vector<16x1xf32> -> vector<16x1xf32>
    %93 = vector.broadcast %92 : vector<16x1xf32> to vector<16x32xf32>
    %94 = arith.mulf %91, %93 : vector<16x32xf32>
    %95 = vector.extract_strided_slice %31 {offsets = [0, 96], sizes = [16, 32], strides = [1, 1]} : vector<16x384xbf16> to vector<16x32xbf16>
    %96 = vector.extract_strided_slice %31 {offsets = [0, 224], sizes = [16, 32], strides = [1, 1]} : vector<16x384xbf16> to vector<16x32xbf16>
    %97 = vector.extract_strided_slice %31 {offsets = [0, 352], sizes = [16, 32], strides = [1, 1]} : vector<16x384xbf16> to vector<16x32xbf16>
    %cst_28 = arith.constant dense<0.000000e+00> : vector<16x16xf32>
    %98 = tpu.matmul %95, %96, %cst_28 {dimension_numbers = #tpu.dot_dimension_numbers<[1], [1], [0], [0], [0, 0, 1, 0], [], []>} : vector<16x32xbf16>, vector<16x32xbf16>, vector<16x16xf32> -> vector<16x16xf32>
    %cst_29 = arith.constant 0.176776692 : f32
    %99 = vector.broadcast %cst_29 : f32 to vector<16x16xf32>
    %100 = arith.mulf %98, %99 : vector<16x16xf32>
    %cst_30 = arith.constant -1.000000e+30 : f32
    %101 = vector.broadcast %cst_30 : f32 to vector<16x16xf32>
    %102 = arith.select %34, %100, %101 : vector<16x16xi1>, vector<16x16xf32>
    %cst_31 = arith.constant dense<0xFF800000> : vector<16xf32>
    %103 = vector.multi_reduction <maximumf>, %102, %cst_31 [1] : vector<16x16xf32> to vector<16xf32>
    %104 = vector.shape_cast %103 : vector<16xf32> to vector<16x1xf32>
    %105 = vector.broadcast %104 : vector<16x1xf32> to vector<16x16xf32>
    %106 = arith.subf %102, %105 : vector<16x16xf32>
    %107 = math.exp %106 : vector<16x16xf32>
    %cst_32 = arith.constant dense<0.000000e+00> : vector<16xf32>
    %108 = vector.multi_reduction <add>, %107, %cst_32 [1] : vector<16x16xf32> to vector<16xf32>
    %109 = vector.shape_cast %108 : vector<16xf32> to vector<16x1xf32>
    %110 = arith.truncf %107 : vector<16x16xf32> to vector<16x16xbf16>
    %cst_33 = arith.constant dense<0.000000e+00> : vector<16x32xf32>
    %111 = tpu.matmul %110, %97, %cst_33 {dimension_numbers = #tpu.dot_dimension_numbers<[1], [0], [0], [1], [0, 0, 1, 1], [], []>} : vector<16x16xbf16>, vector<16x32xbf16>, vector<16x32xf32> -> vector<16x32xf32>
    %112 = tpu.reciprocal %109 {approx = true} : vector<16x1xf32> -> vector<16x1xf32>
    %113 = vector.broadcast %112 : vector<16x1xf32> to vector<16x32xf32>
    %114 = arith.mulf %111, %113 : vector<16x32xf32>
    %115 = tpu.concatenate %54, %74, %94, %114 in 1 : vector<16x32xf32>, vector<16x32xf32>, vector<16x32xf32>, vector<16x32xf32> -> vector<16x128xf32>
    %116 = arith.truncf %115 : vector<16x128xf32> to vector<16x128xbf16>
    %c0_34 = arith.constant 0 : index
    %c0_35 = arith.constant 0 : index
    %117 = vector.load %arg3[%c0_34, %c0_35] : memref<128x128xbf16, #tpu.memory_space<vmem>>, vector<128x128xbf16>
    %cst_36 = arith.constant dense<0.000000e+00> : vector<16x128xf32>
    %118 = tpu.matmul %116, %117, %cst_36 {dimension_numbers = #tpu.dot_dimension_numbers<[1], [0], [0], [1], [0, 0, 1, 1], [], []>} : vector<16x128xbf16>, vector<128x128xbf16>, vector<16x128xf32> -> vector<16x128xf32>
    %119 = vector.broadcast %4 : vector<1x128xf32> to vector<16x128xf32>
    %120 = arith.addf %118, %119 : vector<16x128xf32>
    %121 = arith.addf %0, %120 : vector<16x128xf32>
    %cst_37 = arith.constant dense<0.000000e+00> : vector<16xf32>
    %122 = vector.multi_reduction <add>, %121, %cst_37 [1] : vector<16x128xf32> to vector<16xf32>
    %123 = vector.shape_cast %122 : vector<16xf32> to vector<16x1xf32>
    %cst_38 = arith.constant 1.280000e+02 : f32
    %124 = vector.broadcast %cst_38 : f32 to vector<16x1xf32>
    %125 = arith.divf %123, %124 : vector<16x1xf32>
    %126 = vector.broadcast %125 : vector<16x1xf32> to vector<16x128xf32>
    %127 = arith.subf %121, %126 : vector<16x128xf32>
    %128 = arith.mulf %127, %127 : vector<16x128xf32>
    %cst_39 = arith.constant dense<0.000000e+00> : vector<16xf32>
    %129 = vector.multi_reduction <add>, %128, %cst_39 [1] : vector<16x128xf32> to vector<16xf32>
    %130 = vector.shape_cast %129 : vector<16xf32> to vector<16x1xf32>
    %cst_40 = arith.constant 1.280000e+02 : f32
    %131 = vector.broadcast %cst_40 : f32 to vector<16x1xf32>
    %132 = arith.divf %130, %131 : vector<16x1xf32>
    %cst_41 = arith.constant 9.99999974E-6 : f32
    %133 = vector.broadcast %cst_41 : f32 to vector<16x1xf32>
    %134 = arith.addf %132, %133 : vector<16x1xf32>
    %135 = math.rsqrt %134 : vector<16x1xf32>
    %136 = vector.broadcast %135 : vector<16x1xf32> to vector<16x128xf32>
    %137 = arith.mulf %127, %136 : vector<16x128xf32>
    %138 = vector.broadcast %5 : vector<1x128xf32> to vector<16x128xf32>
    %139 = arith.mulf %137, %138 : vector<16x128xf32>
    %140 = vector.broadcast %6 : vector<1x128xf32> to vector<16x128xf32>
    %141 = arith.addf %139, %140 : vector<16x128xf32>
    %142 = arith.truncf %141 : vector<16x128xf32> to vector<16x128xbf16>
    %c0_42 = arith.constant 0 : index
    %c0_43 = arith.constant 0 : index
    %143 = vector.load %arg4[%c0_42, %c0_43] : memref<128x512xbf16, #tpu.memory_space<vmem>>, vector<128x512xbf16>
    %cst_44 = arith.constant dense<0.000000e+00> : vector<16x512xf32>
    %144 = tpu.matmul %142, %143, %cst_44 {dimension_numbers = #tpu.dot_dimension_numbers<[1], [0], [0], [1], [0, 0, 1, 1], [], []>} : vector<16x128xbf16>, vector<128x512xbf16>, vector<16x512xf32> -> vector<16x512xf32>
    %c0_45 = arith.constant 0 : index
    %c0_46 = arith.constant 0 : index
    %145 = vector.load %arg7[%c0_45, %c0_46] : memref<1x512xf32, #tpu.memory_space<vmem>>, vector<1x512xf32>
    %146 = vector.broadcast %145 : vector<1x512xf32> to vector<16x512xf32>
    %147 = arith.addf %144, %146 : vector<16x512xf32>
    %cst_47 = arith.constant 0.000000e+00 : f32
    %148 = vector.broadcast %cst_47 : f32 to vector<16x512xf32>
    %149 = arith.maximumf %147, %148 : vector<16x512xf32>
    %150 = arith.truncf %149 : vector<16x512xf32> to vector<16x512xbf16>
    %c0_48 = arith.constant 0 : index
    %c0_49 = arith.constant 0 : index
    %151 = vector.load %arg5[%c0_48, %c0_49] : memref<512x128xbf16, #tpu.memory_space<vmem>>, vector<512x128xbf16>
    %cst_50 = arith.constant dense<0.000000e+00> : vector<16x128xf32>
    %152 = tpu.matmul %150, %151, %cst_50 {dimension_numbers = #tpu.dot_dimension_numbers<[1], [0], [0], [1], [0, 0, 1, 1], [], []>} : vector<16x512xbf16>, vector<512x128xbf16>, vector<16x128xf32> -> vector<16x128xf32>
    %153 = vector.broadcast %7 : vector<1x128xf32> to vector<16x128xf32>
    %154 = arith.addf %152, %153 : vector<16x128xf32>
    %155 = arith.addf %121, %154 : vector<16x128xf32>
    %c0_51 = arith.constant 0 : index
    %c0_52 = arith.constant 0 : index
    %156 = vector.load %arg8[%c0_51, %c0_52] : memref<16x128xf32, #tpu.memory_space<vmem>>, vector<16x128xf32>
    tpu.vector_store %arg8[%c0_51, %c0_52], %155 {strides = array<i32>} : memref<16x128xf32, #tpu.memory_space<vmem>>, vector<16x128xf32>,
    return
  }
  func.func @transform_0(%arg0: i32) -> (i32, i32) {
    %c0_i32 = arith.constant 0 : i32
    %c0_i32_0 = arith.constant 0 : i32
    return %arg0, %c0_i32 : i32, i32
  }
  func.func @transform_1(%arg0: i32) -> (i32, i32) {
    %c0_i32 = arith.constant 0 : i32
    %c0_i32_0 = arith.constant 0 : i32
    %c0_i32_1 = arith.constant 0 : i32
    return %c0_i32, %c0_i32_0 : i32, i32
  }
  func.func @transform_2(%arg0: i32) -> (i32, i32) {
    %c0_i32 = arith.constant 0 : i32
    %c0_i32_0 = arith.constant 0 : i32
    %c0_i32_1 = arith.constant 0 : i32
    return %c0_i32, %c0_i32_0 : i32, i32
  }
  func.func @transform_3(%arg0: i32) -> (i32, i32) {
    %c0_i32 = arith.constant 0 : i32
    %c0_i32_0 = arith.constant 0 : i32
    %c0_i32_1 = arith.constant 0 : i32
    return %c0_i32, %c0_i32_0 : i32, i32
  }
  func.func @transform_4(%arg0: i32) -> (i32, i32) {
    %c0_i32 = arith.constant 0 : i32
    %c0_i32_0 = arith.constant 0 : i32
    %c0_i32_1 = arith.constant 0 : i32
    return %c0_i32, %c0_i32_0 : i32, i32
  }
  func.func @transform_5(%arg0: i32) -> (i32, i32) {
    %c0_i32 = arith.constant 0 : i32
    %c0_i32_0 = arith.constant 0 : i32
    %c0_i32_1 = arith.constant 0 : i32
    return %c0_i32, %c0_i32_0 : i32, i32
  }
  func.func @transform_6(%arg0: i32) -> (i32, i32) {
    %c0_i32 = arith.constant 0 : i32
    %c0_i32_0 = arith.constant 0 : i32
    %c0_i32_1 = arith.constant 0 : i32
    return %c0_i32, %c0_i32_0 : i32, i32
  }
  func.func @transform_7(%arg0: i32) -> (i32, i32) {
    %c0_i32 = arith.constant 0 : i32
    %c0_i32_0 = arith.constant 0 : i32
    return %arg0, %c0_i32 : i32, i32
  }
}

</mosaic_0001>

<bundles_post_ra>
// kernel: transformer_block.1
= control target key start
LH: loop header
LB: loop body
LE: loop exit
PB: predicated region body
PF: predicated region fallthrough
CT: control target
= control target key end

     0   :  { %s3227_s0 = inlined_call_operand.hbm [shape: f32[32,128], index: 0, kind: input, shape index: {}]   ;;  %s3228_s1 = inlined_call_operand.hbm [shape: bf16[128,384], index: 1, kind: input, shape index: {}]   ;;  %s3229_s2 = inlined_call_operand.hbm [shape: bf16[128,128], index: 2, kind: input, shape index: {}]   ;;  %s3230_s3 = inlined_call_operand.hbm [shape: bf16[128,512], index: 3, kind: input, shape index: {}]   ;;  %s3231_s4 = inlined_call_operand.hbm [shape: bf16[512,128], index: 4, kind: input, shape index: {}]   ;;  %s3232_s5 = inlined_call_operand.hbm [shape: f32[8,128], index: 5, kind: input, shape index: {}]   ;;  %s3233_s6 = inlined_call_operand.hbm [shape: f32[1,512], index: 6, kind: input, shape index: {}]   ;;  %s3234_s7 = inlined_call_operand.hbm [shape: f32[32,128], index: 7, kind: output, shape index: {}]  }
   0x1   :  { %3235 = sst [smem:[#allocation20_spill]] %s3228_s1 }
   0x2   :  { %3236 = sst [smem:[#allocation21_spill]] %s3229_s2 }
   0x3   :  { %12 = vsyncpa [#allocation3], 0 }
   0x4   :  { %14 = vsyncpa [#allocation3 + $0x1], 0 }
   0x5   :  { %15 = vsyncpa [#allocation6], 0 }
   0x6   :  { %16 = vsyncpa [#allocation9], 0 }
   0x7   :  { %17 = vsyncpa [#allocation12], 0 }
   0x8   :  { %18 = vsyncpa [#allocation4], 0 }
   0x9   :  { %20 = vsyncpa [#allocation4 + $0x1], 0  ;;  %s2899_s24 = smov 0   ;;  %s2901_s25 = smov 0  }
   0xa   :  { %s2903_s26 = smov 0   ;;  %s2905_s27 = smov 0  }
   0xb LB: > { %s3237_s1 = sld [smem:[#allocation20_spill]]  ;;  %s2923_s8 = sadd.s32 4294967295, %s2837_s27   ;;  %s2837_s27 = sphi %s2905_s27, %s3250_s27   ;;  %s2833_s26 = sphi %s2903_s26, %s3249_s26   ;;  %s2829_s25 = sphi %s2901_s25, %s3248_s25   ;;  %s2825_s24 = sphi %s2899_s24, %s3247_s24  }
   0xc   : > { %p1855_p0 = scmp.ge.s32.totalorder %s2837_s27, 1  ;;  %p47_p1 = scmp.eq.s32.totalorder %s2923_s8, 0 }
   0xd   : > { %p209_p2 = scmp.lt.s32.totalorder %s2837_s27, 3  ;;  %s2839_s10 = smov [#allocation5]  }
   0xe   : > { %s222_s11 = sshll.u32 %s2839_s10, 4  ;;  %s248_s14 = sshll.u32 %s3230_s3, 4  ;;  %s223_s11 = int_to_ptr.vmem [resolvable:$true] %s222_s11  ;;  %s249_s14 = int_to_ptr.hbm [resolvable:$true] %s248_s14 }
   0xf   : > { %p2928_p3 = pnand %p1855_p0, %p209_p2  ;;  %s2840_s16 = smov [#allocation8]  }
  0x10   : > { %s250_s17 = sshll.u32 %s2840_s16, 4  ;;  %s2841_s18 = smov 192   ;;  %s251_s17 = int_to_ptr.vmem [resolvable:$true] %s250_s17 }
  0x11   : > { %s220_s30 = sshll.u32 %s3237_s1, 4  ;;  %p2398_p4 = pneg %p2928_p3  ;;  %s221_s30 = int_to_ptr.hbm [resolvable:$true] %s220_s30 }
  0x12   : > { %s2842_s19 = smov 12   ;;  %s2843_s20 = smov 256  }
  0x13   : > { %p2940_p6 = pnand %p2398_p4, %p47_p1  ;;  %s2844_s21 = smov 16  }
  0x14   : > { %s277_s28 = sshll.u32 %s3232_s5, 4  ;;  %s2845_s29 = smov [#allocation11]   ;;  %s278_s28 = int_to_ptr.hbm [resolvable:$true] %s277_s28 }
  0x15   : > { %2401 = dma.hbm_to_vmem [thread:$0]  (!%p2940_p6), %s221_s30, 3072, %s223_s11, [#allocation6], %s2841_s18, %s2841_s18, %s2842_s19  }
  0x16   : > { %2407 = dma.hbm_to_vmem [thread:$0]  (!%p2940_p6), %s249_s14, 4096, %s251_s17, [#allocation9], %s2843_s20, %s2843_s20, %s2844_s21  }
  0x17   : > { %s279_s10 = sshll.u32 %s2845_s29, 4  ;;  %s3240_s2 = sld [smem:[#allocation21_spill]]  ;;  %s280_s10 = int_to_ptr.vmem [resolvable:$true] %s279_s10 }
  0x18   : > { %2413 = dma.hbm_to_vmem [thread:$0]  (!%p2940_p6), %s278_s28, 128, %s280_s10, [#allocation12]  }
  0x19   : > { %s2846_s30 = smov [#allocation7]   ;;  %s2847_s14 = smov 64  }
  0x1a   : > { %s236_s11 = sshll.u32 %s2846_s30, 4  ;;  %s2848_s17 = smov 4   ;;  %s237_s11 = int_to_ptr.vmem [resolvable:$true] %s236_s11 }
  0x1b   : > { %s262_s20 = sshll.u32 %s3231_s4, 4  ;;  %s2849_s21 = smov [#allocation10]   ;;  %s263_s20 = int_to_ptr.hbm [resolvable:$true] %s262_s20 }
  0x1c   : > { %s264_s22 = sshll.u32 %s2849_s21, 4  ;;  %s289_s29 = sshll.u32 %s3233_s6, 4  ;;  %s265_s22 = int_to_ptr.vmem [resolvable:$true] %s264_s22  ;;  %s290_s29 = int_to_ptr.hbm [resolvable:$true] %s289_s29 }
  0x1d   : > { %s234_s16 = sshll.u32 %s3240_s2, 4  ;;  %s2850_s10 = smov [#allocation13]   ;;  %s235_s16 = int_to_ptr.hbm [resolvable:$true] %s234_s16 }
  0x1e   : > { %2404 = dma.hbm_to_vmem [thread:$0]  (!%p2940_p6), %s235_s16, 1024, %s237_s11, [#allocation6], %s2847_s14, %s2847_s14, %s2848_s17  }
  0x1f   : > { %2410 = dma.hbm_to_vmem [thread:$0]  (!%p2940_p6), %s263_s20, 4096, %s265_s22, [#allocation9], %s2847_s14, %s2847_s14, %s2848_s17  }
  0x20   : > { %s291_s12 = sshll.u32 %s2850_s10, 4  ;;  %s1854_s13 = sadd.s32 4294967294, %s2837_s27   ;;  %s292_s12 = int_to_ptr.vmem [resolvable:$true] %s291_s12 }
  0x21   : > { %2416 = dma.hbm_to_vmem [thread:$0]  (!%p2940_p6), %s290_s29, 64, %s292_s12, [#allocation12]  }
  0x22   : > { %s2970_s16 = sadd.s32 1, %s2837_s27   ;;  %s33_s11 = sadd.s32 1, %s2833_s26 }
  0x23   : > { %s30_s30 = ssub.s32 %s2837_s27, %s2970_s16  ;;  %p40_p8 = scmp.ne.s32.totalorder %s2833_s26, %s2829_s25 }
  0x24   : > { %p31_p7 = scmp.eq.s32.totalorder %s30_s30, 0  ;;  %p41_p9 = scmp.eq.s32.totalorder %s2837_s27, 0 }
  0x25   : > { %p46_p10 = scmp.ne.s32.totalorder %s2829_s25, %s2825_s24  ;;  %p196_p13 = scmp.eq.s32.totalorder %s2923_s8, 1 }
  0x26   : > { %s2981_s14 = scalar_select %p31_p7, %s2833_s26, %s33_s11  }
  0x27   : > { %p2983_p11 = por %p41_p9, %p40_p8  ;;  %p2989_p12 = por %p47_p1, %p46_p10 }
  0x28   : > { %p202_p0 = scmp.eq.s32.totalorder %s1854_s13, 1  ;;  %p2431_p2 = scmp.lt.s32.totalorder %s2837_s27, 2 }
  0x29   : > { %s302_s18 = sand.u32 1, %s2833_s26   ;;  %p2996_p4 = por %p196_p13, %p40_p8 }
  0x2a   : > { %p3000_p6 = por %p202_p0, %p46_p10  ;;  %s1863_s21 = sshll.u32 %s302_s18, 4 }
  0x2b   : > { %s2272_s22 = sshll.u32 %s2837_s27, 4  ;;  %s306_s10 = scalar_lea.vmem [#allocation2], %s1863_s21 }
  0x2c   : > { %s311_s29 = scalar_lea.hbm %s3227_s0, %s2272_s22  ;;  %s314_s12 = sshll.u32 %s306_s10, 4  ;;  %s315_s12 = int_to_ptr.vmem [resolvable:$true] %s314_s12 }
  0x2d   : > { %s312_s30 = sshll.u32 %s311_s29, 4  ;;  %p3010_p7 = pnand %p2431_p2, %p2983_p11  ;;  %s313_s30 = int_to_ptr.hbm [resolvable:$true] %s312_s30 }
  0x2e   : > { %s303_s11 = scalar_lea.sflag [#allocation3], %s302_s18  ;;  %s2729_s1 = sshra.s32 %s313_s30, 4  ;;  %s2730_s1 = int_to_ptr.hbm [resolvable:$true] %s2729_s1 }
  0x2f   : > { %s2731_s2 = scalar_lea.hbm %s2730_s1, 16  ;;  %p2733_p9 = pneg %p3010_p7 }
  0x30   : > { %p2732_p8 = scmp.ne.s32.totalorder %s2730_s1, %s2731_s2  ;;  %s2736_s23 = scalar_lea.hbm %s3227_s0, 32 }
  0x31   : > { %p2737_p11 = scmp.lt.s32.totalorder %s2730_s1, %s3227_s0  ;;  %p2738_p0 = scmp.lt.s32.totalorder %s2736_s23, %s2731_s2 }
  0x32   : > { %p2734_p10 = pnand %p2733_p9, %p2732_p8 }
  0x33   : > { %p2739_p2 = por %p2738_p0, %p2737_p11 }
  0x34   : > { %p2735_p13 = pneg %p2734_p10 }
  0x36   : > { %p2740_p5 = pnand %p2739_p2, %p2735_p13 }
  0x38   : > { %2743 = shalt.err (!%p2740_p5)
}
  0x39   : > { %s2851_s18 = smov 128   ;;  %s2852_s29 = smov 8  }
  0x3a   : > { %2420 = dma.hbm_to_vmem [thread:$0]  (!%p3010_p7), %s313_s30, 256, %s315_s12, %s303_s11, %s2851_s18, %s2851_s18, %s2852_s29  }
  0x3b   : > { %326 = sbr.rel (%p2928_p3) target bundleno = 2051 (0x803), region = 48  ;;  %s3027_s10 = sand.u32 (!%p2928_p3), 1, %s2829_s25  }
  0x3c   : > { %s1867_s1 = sshll.u32 (!%p2928_p3), %s3027_s10, 4  ;;  %s329_s2 = scalar_lea.sflag (!%p2928_p3), [#allocation3], %s3027_s10 }
  0x3d   : > { %s332_s21 = scalar_lea.vmem (!%p2928_p3), [#allocation2], %s1867_s1 }
  0x40   : > { %2804 = dma.done.wait (%p2989_p12), %s329_s2, 256  }
  0x41   : > { %2806 = vsyncadd (%p2989_p12), %s329_s2, 4294967040 }
  0x42   : > { %2808 = dma.done.wait (%p47_p1), [#allocation6], 4096  }
  0x43   : > { %2810 = vsyncadd (%p47_p1), [#allocation6], 4294963200 }
  0x44   : > { %2812 = dma.done.wait (%p47_p1), [#allocation9], 8192  }
  0x45   : > { %2814 = vsyncadd (%p47_p1), [#allocation9], 4294959104 }
  0x46   : > { %2816 = dma.done.wait (%p47_p1), [#allocation12], 192  }
  0x47   : > { %2818 = vsyncadd (%p47_p1), [#allocation12], 4294967104  ;;  %v3049_v0 = vld [vmem:[%s332_s21] sm:$0xff]  ;;  %v3052_v1 = vld [vmem:[%s332_s21 + $0x8] sm:$0xff]  ;;  %v2853_v2 = vmov 128.0   ;;  %vm675_vm7 = vcmask 261120  }
  0x48   : > { %400 = vadd.xlane.f32.xlu0 %v3049_v0  ;;  %2506 = vrcp.f32 %v2853_v2  ;;  %v1961_v17 = vld [vmem:[#allocation5 + $0xa8] sm:$0xf]  ;;  %v2295_v18 = vld [vmem:[#allocation5 + $0xb0] sm:$0xf0]  ;;  %v2294_v19 = vld [vmem:[#allocation5 + $0xac] sm:$0xf] }
  0x49   : > { %v1962_v20 = vor.u32 %v2295_v18, %v1961_v17  ;;  %v1963_v21 = vld [vmem:[#allocation5 + $0xb4] sm:$0xf0]  ;;  %v1969_v22 = vld [vmem:[#allocation5 + $0xb0] sm:$0xf]  ;;  %v2296_v23 = vld [vmem:[#allocation5 + $0xb8] sm:$0xf0] }
  0x4a   : > { %v1966_v24 = vor.u32 %v2294_v19, %v1963_v21  ;;  %v1970_v25 = vor.u32 %v2296_v23, %v1969_v22  ;;  %v1949_v26 = vld [vmem:[#allocation5 + $0x90] sm:$0xf]  ;;  %v2292_v27 = vld [vmem:[#allocation5 + $0x98] sm:$0xf0]  ;;  %v2291_v28 = vld [vmem:[#allocation5 + $0x94] sm:$0xf] }
  0x4b   : > { %614 = vmatpush.bf16.msra.mxu0 %v1962_v20  ;;  %v1950_v29 = vor.u32 %v2292_v27, %v1949_v26  ;;  %v1951_v30 = vld [vmem:[#allocation5 + $0x9c] sm:$0xf0]  ;;  %v1957_v31 = vld [vmem:[#allocation5 + $0x98] sm:$0xf]  ;;  %v2293_v32 = vld [vmem:[#allocation5 + $0xa0] sm:$0xf0] }
  0x4c   : > { %628 = vmatpush.bf16.msra.mxu1 %v1966_v24  ;;  %642 = vmatpush.bf16.msra.mxu2 %v1970_v25  ;;  %v1954_v33 = vor.u32 %v2291_v28, %v1951_v30  ;;  %v1958_v34 = vor.u32 %v2293_v32, %v1957_v31  ;;  %v1937_v35 = vld [vmem:[#allocation5 + $0x78] sm:$0xf]  ;;  %v2289_v36 = vld [vmem:[#allocation5 + $0x80] sm:$0xf0]  ;;  %v2288_v37 = vld [vmem:[#allocation5 + $0x7c] sm:$0xf] }
  0x4d   : > { %v1938_v38 = vor.u32 %v2289_v36, %v1937_v35  ;;  %v1939_v39 = vld [vmem:[#allocation5 + $0x84] sm:$0xf0]  ;;  %v1945_v40 = vld [vmem:[#allocation5 + $0x80] sm:$0xf]  ;;  %v2290_v41 = vld [vmem:[#allocation5 + $0x88] sm:$0xf0] }
  0x4e   : > { %v2507_v3 = vpop.eup %2506  ;;  %v1942_v42 = vor.u32 %v2288_v37, %v1939_v39  ;;  %v1946_v43 = vor.u32 %v2290_v41, %v1945_v40  ;;  %v1925_v44 = vld [vmem:[#allocation5 + $0x60] sm:$0xf]  ;;  %v2286_v45 = vld [vmem:[#allocation5 + $0x68] sm:$0xf0]  ;;  %v2285_v46 = vld [vmem:[#allocation5 + $0x64] sm:$0xf] }
  0x4f   : > { %v405_v4 = vmul.f32 128.0, %v2507_v3  ;;  %vm409_vm0 = vweird.f32 %v2507_v3  ;;  %615 = vmatpush.bf16.msra.mxu0 %v1950_v29  ;;  %v1926_v47 = vor.u32 %v2286_v45, %v1925_v44  ;;  %v1927_v48 = vld [vmem:[#allocation5 + $0x6c] sm:$0xf0]  ;;  %v1933_v49 = vld [vmem:[#allocation5 + $0x68] sm:$0xf]  ;;  %s2854_s9 = smov 64  }
  0x50   : > { %402 = vadd.xlane.f32.xlu0 %v3052_v1  ;;  %629 = vmatpush.bf16.msra.mxu1 %v1954_v33  ;;  %v2287_v50 = vld [vmem:[#allocation5 + $0x70] sm:$0xf0]  ;;  %v1930_v51 = vor.u32 %v2285_v46, %v1927_v48  ;;  %v1913_v53 = vld [vmem:[#allocation5 + $0x48] sm:$0xf]  ;;  %v2282_v55 = vld [vmem:[#allocation5 + $0x4c] sm:$0xf] }
  0x51   : > { %v406_v5 = vsub.f32 1.0, %v405_v4  ;;  %643 = vmatpush.bf16.msra.mxu2 %v1958_v34  ;;  %v1934_v52 = vor.u32 %v2287_v50, %v1933_v49  ;;  %v2283_v54 = vld [vmem:[#allocation5 + $0x50] sm:$0xf0]  ;;  %v1915_v57 = vld [vmem:[#allocation5 + $0x54] sm:$0xf0]  ;;  %s2855_s15 = smov 96  }
  0x52   : > { %v1914_v56 = vor.u32 %v2283_v54, %v1913_v53  ;;  %v1921_v58 = vld [vmem:[#allocation5 + $0x50] sm:$0xf]  ;;  %v2284_v59 = vld [vmem:[#allocation5 + $0x58] sm:$0xf0]  ;;  %v1918_v60 = vor.u32 %v2282_v55, %v1915_v57  ;;  %v2279_v2 = vld [vmem:[#allocation5 + $0x34] sm:$0xf] }
  0x53   : > { %v407_v6 = vmul.f32 %v2507_v3, %v406_v5  ;;  %616 = vmatpush.bf16.msra.mxu0 %v1938_v38  ;;  %v1922_v61 = vor.u32 %v2284_v59, %v1921_v58  ;;  %v1901_v62 = vld [vmem:[#allocation5 + $0x30] sm:$0xf]  ;;  %v2280_v63 = vld [vmem:[#allocation5 + $0x38] sm:$0xf0]  ;;  %v1903_v4 = vld [vmem:[#allocation5 + $0x3c] sm:$0xf0] }
  0x54   : > { %630 = vmatpush.bf16.msra.mxu1 %v1942_v42  ;;  %v1909_v5 = vld [vmem:[#allocation5 + $0x38] sm:$0xf]  ;;  %v1897_v17 = vld [vmem:[#allocation5 + $0x20] sm:$0xf]  ;;  %v2278_v18 = vld [vmem:[#allocation5 + $0x28] sm:$0xf0] }
  0x55   : > { %v408_v7 = vadd.f32 %v2507_v3, %v407_v6  ;;  %644 = vmatpush.bf16.msra.mxu2 %v1946_v43  ;;  %v2281_v6 = vld [vmem:[#allocation5 + $0x40] sm:$0xf0]  ;;  %v1898_v20 = vor.u32 %v2278_v18, %v1897_v17  ;;  %v1877_v21 = vld [vmem:[#allocation5] sm:$0xf]  ;;  %v2274_v22 = vld [vmem:[#allocation5 + $0x8] sm:$0xf0] }
  0x56   : > { %v2273_v23 = vld [vmem:[#allocation5 + $0x4] sm:$0xf]  ;;  %v1878_v25 = vor.u32 %v2274_v22, %v1877_v21  ;;  %v1879_v26 = vld [vmem:[#allocation5 + $0xc] sm:$0xf0]  ;;  %v1885_v27 = vld [vmem:[#allocation5 + $0x8] sm:$0xf] }
  0x57   : > { %v3055_v8 = vsel %vm409_vm0, %v2507_v3, %v408_v7  ;;  %617 = vmatpush.bf16.msra.mxu0 %v1926_v47  ;;  %v1902_v3 = vor.u32 %v2280_v63, %v1901_v62  ;;  %v1906_v7 = vor.u32 %v2279_v2, %v1903_v4  ;;  %v2275_v28 = vld [vmem:[#allocation5 + $0x10] sm:$0xf0]  ;;  %v1882_v30 = vor.u32 %v2273_v23, %v1879_v26  ;;  %v3071_v47 = vld [vmem:[#allocation11] sm:$0xff]  ;;  %s2856_s12 = smov 32   ;;  %s2369_s30 = sshll.u32 %s2923_s8, 4 }
  0x58   : > { %631 = vmatpush.bf16.msra.mxu1 %v1930_v51  ;;  %v1886_v31 = vor.u32 %v2275_v28, %v1885_v27  ;;  %v447_v50 = vperm.slane %v3071_v47, 0  ;;  %v450_v55 = vperm.slane %v3071_v47, 1  ;;  %v660_v23 = vlaneseq  ;;  %s393_s13 = scalar_lea.vmem [#allocation14], %s1867_s1  ;;  %s1720_s23 = scalar_lea.hbm %s3234_s7, %s2369_s30 }
  0x59   : > { %645 = vmatpush.bf16.msra.mxu2 %v1934_v52  ;;  %vm700_vm9 = vcmask 130048   ;;  %vm986_vm11 = vcmask 523264   ;;  %vm989_vm12 = vcmask 785408   ;;  %s1721_s28 = sshll.u32 %s393_s13, 4  ;;  %s1723_s17 = sshll.u32 %s1720_s23, 4  ;;  %s1722_s28 = int_to_ptr.vmem [resolvable:$true] %s1721_s28  ;;  %s1724_s17 = int_to_ptr.hbm [resolvable:$true] %s1723_s17 }
  0x5a   : > { %s1709_s8 = scalar_lea.sflag [#allocation4], %s3027_s10  ;;  %s2773_s18 = sshra.s32 %s1724_s17, 4  ;;  %s2774_s18 = int_to_ptr.hbm [resolvable:$true] %s2773_s18 }
  0x5b   : > { %618 = vmatpush.bf16.msra.mxu0 %v1914_v56  ;;  %s2775_s29 = scalar_lea.hbm %s2774_s18, 16  ;;  %s2779_s21 = scalar_lea.hbm %s3234_s7, 32 }
  0x5c   : > { %632 = vmatpush.bf16.msra.mxu1 %v1918_v60  ;;  %p2776_p1 = scmp.ne.s32.totalorder %s2774_s18, %s2775_s29  ;;  %p2780_p12 = scmp.lt.s32.totalorder %s2774_s18, %s3234_s7 }
  0x5d   : > { %646 = vmatpush.bf16.msra.mxu2 %v1922_v61  ;;  %p2781_p7 = scmp.lt.s32.totalorder %s2779_s21, %s2775_s29 }
  0x5e   : > { %p2777_p3 = pnand %p2776_p1, %p2996_p4 }
  0x5f   : > { %619 = vmatpush.bf16.msra.mxu0 %v1902_v3  ;;  %p2782_p8 = por %p2781_p7, %p2780_p12 }
  0x60   : > { %633 = vmatpush.bf16.msra.mxu1 %v1906_v7  ;;  %p2778_p5 = pneg %p2777_p3 }
  0x62   : > { %p2783_p9 = pnand %p2782_p8, %p2778_p5 }
  0xbb   : > { %v401_v9 = vpop.xlane.xlu0 %400 }
  0xbc   : > { %v411_v10 = vmul.f32 %v3055_v8, %v401_v9  ;;  %v1910_v9 = vor.u32 %v2281_v6, %v1909_v5 }
  0xbe   : > { %v3059_v11 = vsub.f32 %v3049_v0, %v411_v10  ;;  %647 = vmatpush.bf16.msra.mxu2 %v1910_v9  ;;  %v1889_v10 = vld [vmem:[#allocation5 + $0x18] sm:$0xf] }
  0xc0   : > { %v415_v12 = vmul.f32 %v3059_v11, %v3059_v11 }
  0xc2   : > { %417 = vadd.xlane.f32.xlu1 %v415_v12  ;;  %v2277_v12 = vld [vmem:[#allocation5 + $0x20] sm:$0xf0]  ;;  %648 = vmatpush.bf16.msra.mxu2 %v1898_v20 }
  0xc3   : > { %v403_v13 = vpop.xlane.xlu0 %402 }
  0xc4   : > { %v412_v14 = vmul.f32 %v3055_v8, %v403_v13  ;;  %v2276_v13 = vld [vmem:[#allocation5 + $0x1c] sm:$0xf] }
  0xc6   : > { %v3065_v15 = vsub.f32 %v3052_v1, %v412_v14  ;;  %v1890_v14 = vor.u32 %v2277_v12, %v1889_v10  ;;  %649 = vmatpush.bf16.msra.mxu2 %v1886_v31 }
  0xc8   : > { %v416_v16 = vmul.f32 %v3065_v15, %v3065_v15  ;;  %620 = vmatpush.bf16.msra.mxu0 %v1890_v14 }
  0xca   : > { %419 = vadd.xlane.f32.xlu1 %v416_v16  ;;  %v1891_v16 = vld [vmem:[#allocation5 + $0x24] sm:$0xf0] }
  0xcb   : > { %v1894_v19 = vor.u32 %v2276_v13, %v1891_v16 }
  0xcc   : > { %621 = vmatpush.bf16.msra.mxu0 %v1878_v25  ;;  %v3091_v25 = vand.u32 127, %v660_v23 }
  0xcd   : > { %634 = vmatpush.bf16.msra.mxu1 %v1894_v19 }
  0xd1   : > { %635 = vmatpush.bf16.msra.mxu1 %v1882_v30 }
 0x135   : > { %v418_v24 = vpop.xlane.xlu1 %417 }
 0x136   : > { %v421_v29 = vmul.f32 %v418_v24, %v3055_v8  ;;  %v3089_v24 = vshrl.u32 %v660_v23, 7 }
 0x138   : > { %v423_v32 = vadd.f32 1e-05, %v421_v29  ;;  %vm665_vm8 = vcmp.le.s32.totalorder %v3091_v25, %v3089_v24  ;;  %v662_v30 = vadd.s32 8, %v3089_v24 }
 0x13a   : > { %2508 = vrsqrt.f32 %v423_v32  ;;  %vm431_vm2 = vweird.f32 %v423_v32  ;;  %vm666_vm10 = vcmp.le.s32.totalorder %v3091_v25, %v662_v30 }
 0x13d   : > { %v420_v33 = vpop.xlane.xlu1 %419 }
 0x13e   : > { %v422_v34 = vmul.f32 %v420_v33, %v3055_v8 }
 0x140   : > { %v2509_v35 = vpop.eup %2508  ;;  %v424_v36 = vadd.f32 1e-05, %v422_v34 }
 0x141   : > { %v426_v37 = vmul.f32 %v2509_v35, %v423_v32  ;;  %vm432_vm1 = vweird.f32 %v2509_v35 }
 0x142   : > { %2510 = vrsqrt.f32 %v424_v36  ;;  %vm433_vm3 = vmor %vm431_vm2, %vm432_vm1  ;;  %vm441_vm5 = vweird.f32 %v424_v36 }
 0x143   : > { %v427_v38 = vmul.f32 %v2509_v35, %v426_v37 }
 0x145   : > { %v428_v39 = vmul.f32 0.5, %v427_v38 }
 0x147   : > { %v429_v40 = vsub.f32 1.5, %v428_v39 }
 0x148   : > { %v2511_v41 = vpop.eup %2510 }
 0x149   : > { %v430_v42 = vmul.f32 %v2509_v35, %v429_v40  ;;  %v436_v43 = vmul.f32 %v2511_v41, %v424_v36  ;;  %vm442_vm4 = vweird.f32 %v2511_v41 }
 0x14a   : > { %vm443_vm6 = vmor %vm441_vm5, %vm442_vm4 }
 0x14b   : > { %v437_v44 = vmul.f32 %v2511_v41, %v436_v43  ;;  %v434_v45 = vsel %vm433_vm3, %v2509_v35, %v430_v42 }
 0x14c   : > { %v445_v49 = vmul.f32 %v434_v45, %v3059_v11 }
 0x14d   : > { %v438_v46 = vmul.f32 0.5, %v437_v44 }
 0x14e   : > { %v448_v54 = vmul.f32 %v447_v50, %v445_v49 }
 0x14f   : > { %v439_v48 = vsub.f32 1.5, %v438_v46 }
 0x150   : > { %v451_v57 = vadd.f32 %v450_v55, %v448_v54 }
 0x151   : > { %v440_v51 = vmul.f32 %v2511_v41, %v439_v48 }
 0x153   : > { %v444_v52 = vsel %vm443_vm6, %v2511_v41, %v440_v51 }
 0x154   : > { %v446_v53 = vmul.f32 %v444_v52, %v3065_v15 }
 0x156   : > { %v449_v56 = vmul.f32 %v447_v50, %v446_v53 }
 0x158   : > { %v452_v58 = vadd.f32 %v450_v55, %v449_v56 }
 0x15a   : > { %v453_v59 = vpack.c.bf16 %v452_v58, %v451_v57 }
 0x15c   : > { %622 = vmatmul.bf16.vlgmr.msra.gmra.mxu0 %v453_v59  ;;  %636 = vmatmul.bf16.vlgmr.msra.gmra.mxu1 %v453_v59 }
 0x15d   : > { %650 = vmatmul.bf16.vlgmr.msra.gmra.mxu2 %v453_v59 }
 0x1d9   : > { %v623_v60 = vpop.f32.mrf.mxu0  ;;  %v637_v11 = vpop.f32.mrf.mxu1 }
 0x1da   : > { %v656_v61 = vpack.c.bf16 %v637_v11, %v623_v60 }
 0x1dc   : > { %v669_v4 = vunpack.c.l.b16 %v656_v61  ;;  %v672_v5 = vunpack.c.h.b16 %v656_v61 }
 0x1e0   : > { %v651_v62 = vpop.f32.mrf.mxu2 }
 0x1e1   : > { %v625_v63 = vpop.f32.mrf.mxu0  ;;  %v639_v2 = vpop.f32.mrf.mxu1  ;;  %v657_v10 = vpack.c.bf16 %v651_v62, %v651_v62 }
 0x1e2   : > { %v658_v3 = vpack.c.bf16 %v639_v2, %v625_v63 }
 0x1e3   : > { %v722_v16 = vunpack.c.l.b16 %v657_v10 }
 0x1e4   : > { %v670_v15 = vunpack.c.l.b16 %v658_v3  ;;  %v673_v6 = vunpack.c.h.b16 %v658_v3 }
 0x1e6   : > { %v671_v7 = vpack.c.b16 %v670_v15, %v669_v4  ;;  %v674_v9 = vpack.c.b16 %v673_v6, %v672_v5 }
 0x1e8   : > { %v653_v12 = vpop.f32.mrf.mxu2  ;;  %820 = vrot.lane.b32.xlu2 %v674_v9, %s2854_s9  ;;  %749 = vrot.lane.b32.xlu0 %v674_v9, %s2855_s15  ;;  %v680_v13 = vsel %vm675_vm7, %v674_v9, 0 }
 0x1e9   : > { %v659_v14 = vpack.c.bf16 %v653_v12, %v653_v12  ;;  %747 = vrot.lane.b32.xlu1 %v671_v7, %s2855_s15  ;;  %689 = vmatpush.bf16.xpose.msra.mxu3 %v680_v13 }
 0x1eb   : > { %v723_v17 = vunpack.c.l.b16 %v659_v14 }
 0x1ed   : > { %v3081_v18 = vpack.c.b16 %v723_v17, %v722_v16 }
 0x1f0   : > { %891 = vrot.lane.b32.xlu0 %v674_v9, %s2856_s12  ;;  %1971 = vmatmul.msk.bf16.vlgmr.msra.gmra.mxu3 %vm675_vm7, %v671_v7 }
 0x1f1   : > { %736 = vmatpush.bf16.msrb.mxu3 %v3081_v18  ;;  %889 = vrot.lane.b32.xlu1 %v671_v7, %s2856_s12 }
 0x242   : > { %v821_v19 = vpop.permute.xlu2 %820 }
 0x243   : > { %v826_v20 = vsel %vm675_vm7, %v821_v19, 0 }
 0x244   : > { %835 = vmatpush.bf16.xpose.msrb.mxu2 %v826_v20 }
 0x25a   : > { %v750_v21 = vpop.permute.xlu0 %749 }
 0x25b   : > { %v755_v22 = vsel %vm675_vm7, %v750_v21, 0  ;;  %v748_v48 = vpop.permute.xlu1 %747 }
 0x25c   : > { %764 = vmatpush.bf16.xpose.msra.mxu3 %v755_v22 }
 0x262   : > { %v892_v44 = vpop.permute.xlu0 %891 }
 0x263   : > { %v897_v46 = vsel %vm675_vm7, %v892_v44, 0  ;;  %v890_v49 = vpop.permute.xlu1 %889 }
 0x273   : > { %v691_v26 = vpop.f32.mrf.mxu3 }
 0x274   : > { %v696_v27 = vmul.f32 0.17677669, %v691_v26 }
 0x276   : > { %v698_v28 = vsel %vm665_vm8, %v696_v27, -1e+30 }
 0x277   : > { %v701_v29 = vsel %vm700_vm9, %v698_v28, -inf }
 0x278   : > { %702 = vmax.xlane.f32.xlu2 %v701_v29 }
 0x27b   : > { %v693_v31 = vpop.f32.mrf.mxu3 }
 0x27c   : > { %v697_v32 = vmul.f32 0.17677669, %v693_v31 }
 0x27e   : > { %v699_v33 = vsel %vm666_vm10, %v697_v32, -1e+30 }
 0x27f   : > { %v704_v34 = vsel %vm700_vm9, %v699_v33, -inf }
 0x280   : > { %705 = vmax.xlane.f32.xlu2 %v704_v34 }
 0x298   : > { %818 = vrot.lane.b32.xlu2 %v671_v7, %s2854_s9 }
 0x2eb   : > { %v703_v35 = vpop.xlane.xlu2 %702 }
 0x2ec   : > { %v707_v36 = vsub.f32 %v698_v28, %v703_v35 }
 0x2ee   : > { %v709_v37 = vmul.f32 1.442695, %v707_v36 }
 0x2f0   : > { %2512 = vpow2.f32 %v709_v37 }
 0x2f3   : > { %v706_v38 = vpop.xlane.xlu2 %705 }
 0x2f4   : > { %v708_v39 = vsub.f32 %v699_v33, %v706_v38 }
 0x2f6   : > { %v711_v40 = vmul.f32 1.442695, %v708_v39  ;;  %v2513_v42 = vpop.eup %2512 }
 0x2f7   : > { %v713_v25 = vsel %vm700_vm9, %v2513_v42, 0.0 }
 0x2f8   : > { %2514 = vpow2.f32 %v711_v40 }
 0x2fb   : > { %v819_v41 = vpop.permute.xlu2 %818 }
 0x2fc   : > { %1975 = vmatmul.msk.bf16.vlgmr.msrb.gmra.mxu2 %vm675_vm7, %v819_v41 }
 0x2fe   : > { %v3106_v43 = vpop.eup %2514 }
 0x2ff   : > { %v719_v45 = vpack.c.bf16 %v3106_v43, %v2513_v42 }
 0x301   : > { %1972 = vmatmul.msk.bf16.vlgmr.msrb.gmra.mxu3 %vm700_vm9, %v719_v45 }
 0x302   : > { %906 = vmatpush.bf16.xpose.msrb.mxu3 %v897_v46 }
 0x311   : > { %1973 = vmatmul.msk.bf16.vlgmr.msra.gmra.mxu3 %vm675_vm7, %v748_v48 }
 0x321   : > { %1977 = vmatmul.msk.bf16.vlgmr.msrb.gmra.mxu3 %vm675_vm7, %v890_v49  ;;  %v716_v49 = vsel %vm700_vm9, %v3106_v43, 0.0 }
 0x37f   : > { %v837_v50 = vpop.f32.mrf.mxu2 }
 0x380   : > { %v842_v51 = vmul.f32 0.17677669, %v837_v50 }
 0x382   : > { %v844_v52 = vsel %vm665_vm8, %v842_v51, -1e+30 }
 0x383   : > { %v846_v53 = vsel %vm700_vm9, %v844_v52, -inf }
 0x384   : > { %v3117_v54 = vpop.f32.mrf.mxu3  ;;  %847 = vmax.xlane.f32.xlu1 %v846_v53 }
 0x387   : > { %v839_v55 = vpop.f32.mrf.mxu2 }
 0x388   : > { %v843_v56 = vmul.f32 0.17677669, %v839_v55 }
 0x38a   : > { %v845_v57 = vsel %vm666_vm10, %v843_v56, -1e+30 }
 0x38b   : > { %v849_v58 = vsel %vm700_vm9, %v845_v57, -inf }
 0x38c   : > { %v3122_v59 = vpop.f32.mrf.mxu3  ;;  %850 = vmax.xlane.f32.xlu0 %v849_v58 }
 0x394   : > { %v766_v60 = vpop.f32.mrf.mxu3 }
 0x395   : > { %v771_v11 = vmul.f32 0.17677669, %v766_v60 }
 0x397   : > { %v773_v61 = vsel %vm665_vm8, %v771_v11, -1e+30 }
 0x398   : > { %v775_v62 = vsel %vm700_vm9, %v773_v61, -inf }
 0x399   : > { %776 = vmax.xlane.f32.xlu0 %v775_v62 }
 0x39c   : > { %v768_v63 = vpop.f32.mrf.mxu3 }
 0x39d   : > { %v772_v2 = vmul.f32 0.17677669, %v768_v63 }
 0x39f   : > { %v774_v3 = vsel %vm666_vm10, %v772_v2, -1e+30 }
 0x3a0   : > { %v778_v4 = vsel %vm700_vm9, %v774_v3, -inf }
 0x3a1   : > { %779 = vmax.xlane.f32.xlu2 %v778_v4 }
 0x3a4   : > { %v908_v5 = vpop.f32.mrf.mxu3 }
 0x3a5   : > { %v913_v15 = vmul.f32 0.17677669, %v908_v5 }
 0x3a7   : > { %v915_v6 = vsel %vm665_vm8, %v913_v15, -1e+30 }
 0x3a8   : > { %v917_v7 = vsel %vm700_vm9, %v915_v6, -inf }
 0x3a9   : > { %918 = vmax.xlane.f32.xlu1 %v917_v7 }
 0x3ac   : > { %v910_v9 = vpop.f32.mrf.mxu3 }
 0x3ad   : > { %v914_v10 = vmul.f32 0.17677669, %v910_v9 }
 0x3af   : > { %v916_v12 = vsel %vm666_vm10, %v914_v10, -1e+30 }
 0x3b0   : > { %v920_v13 = vsel %vm700_vm9, %v916_v12, -inf }
 0x3b1   : > { %921 = vmax.xlane.f32.xlu0 %v920_v13 }
 0x3b9   : > { %794 = vrot.lane.b32.xlu2 %v3081_v18, %s2855_s15 }
 0x3c2   : > { %865 = vrot.lane.b32.xlu1 %v3081_v18, %s2854_s9 }
 0x3c5   : > { %936 = vrot.lane.b32.xlu0 %v3081_v18, %s2856_s12 }
 0x3f7   : > { %v848_v14 = vpop.xlane.xlu1 %847 }
 0x3f8   : > { %v852_v16 = vsub.f32 %v844_v52, %v848_v14 }
 0x3fa   : > { %v854_v17 = vmul.f32 1.442695, %v852_v16 }
 0x3fc   : > { %2516 = vpow2.f32 %v854_v17 }
 0x3ff   : > { %v851_v19 = vpop.xlane.xlu0 %850 }
 0x400   : > { %v853_v20 = vsub.f32 %v845_v57, %v851_v19 }
 0x402   : > { %v2517_v21 = vpop.eup %2516  ;;  %v856_v22 = vmul.f32 1.442695, %v853_v20 }
 0x403   : > { %v858_v23 = vsel %vm700_vm9, %v2517_v21, 0.0 }
 0x404   : > { %2518 = vpow2.f32 %v856_v22  ;;  %859 = vadd.xlane.f32.xlu1 %v858_v23  ;;  %v2304_v23 = vld [vmem:[#allocation7 + $0x38] sm:$0xff] }
 0x405   : > { %1058 = vmatpush.bf16.msrb.mxu1 %v2304_v23  ;;  %v2117_v23 = vld [vmem:[#allocation8 + $0xc8] sm:$0xf] }
 0x40a   : > { %v2519_v24 = vpop.eup %2518 }
 0x40b   : > { %v861_v26 = vsel %vm700_vm9, %v2519_v24, 0.0  ;;  %v864_v52 = vpack.c.bf16 %v2519_v24, %v2517_v21  ;;  %v2303_v24 = vld [vmem:[#allocation7 + $0x30] sm:$0xff] }
 0x40c   : > { %714 = vadd.xlane.f32.xlu1 %v713_v25  ;;  %862 = vadd.xlane.f32.xlu2 %v861_v26  ;;  %v777_v18 = vpop.xlane.xlu0 %776  ;;  %v2302_v25 = vld [vmem:[#allocation7 + $0x28] sm:$0xff]  ;;  %v2301_v26 = vld [vmem:[#allocation7 + $0x20] sm:$0xff] }
 0x40d   : > { %v781_v27 = vsub.f32 %v773_v61, %v777_v18  ;;  %1059 = vmatpush.bf16.msrb.mxu1 %v2303_v24  ;;  %v2300_v18 = vld [vmem:[#allocation7 + $0x18] sm:$0xff] }
 0x40e   : > { %v2332_v24 = vld [vmem:[#allocation8 + $0xd4] sm:$0xf0] }
 0x40f   : > { %v783_v28 = vmul.f32 1.442695, %v781_v27  ;;  %v2299_v27 = vld [vmem:[#allocation7 + $0x10] sm:$0xff] }
 0x411   : > { %2520 = vpow2.f32 %v783_v28  ;;  %1060 = vmatpush.bf16.msrb.mxu1 %v2302_v25  ;;  %v2298_v28 = vld [vmem:[#allocation7 + $0x8] sm:$0xff] }
 0x414   : > { %v780_v29 = vpop.xlane.xlu2 %779 }
 0x415   : > { %v782_v30 = vsub.f32 %v774_v3, %v780_v29  ;;  %1061 = vmatpush.bf16.msrb.mxu1 %v2301_v26  ;;  %v2297_v29 = vld [vmem:[#allocation7] sm:$0xff]  ;;  %v2118_v26 = vor.u32 %v2332_v24, %v2117_v23  ;;  %v2031_v24 = vld [vmem:[#allocation8 + $0x30] sm:$0xf0] }
 0x417   : > { %v2521_v31 = vpop.eup %2520  ;;  %v785_v32 = vmul.f32 1.442695, %v782_v30 }
 0x418   : > { %v787_v33 = vsel %vm700_vm9, %v2521_v31, 0.0 }
 0x419   : > { %2522 = vpow2.f32 %v785_v32  ;;  %788 = vadd.xlane.f32.xlu2 %v787_v33  ;;  %1062 = vmatpush.bf16.msrb.mxu1 %v2300_v18  ;;  %v2330_v18 = vld [vmem:[#allocation8 + $0xcc] sm:$0xf] }
 0x41c   : > { %v919_v34 = vpop.xlane.xlu1 %918  ;;  %v795_v35 = vpop.permute.xlu2 %794 }
 0x41d   : > { %v923_v36 = vsub.f32 %v915_v6, %v919_v34  ;;  %807 = vmatpush.bf16.msrb.mxu0 %v795_v35  ;;  %1063 = vmatpush.bf16.msrb.mxu1 %v2299_v27  ;;  %v2119_v27 = vld [vmem:[#allocation8 + $0xd8] sm:$0xf0] }
 0x41f   : > { %v2523_v37 = vpop.eup %2522  ;;  %v925_v38 = vmul.f32 1.442695, %v923_v36 }
 0x420   : > { %v790_v39 = vsel %vm700_vm9, %v2523_v37, 0.0  ;;  %v793_v40 = vpack.c.bf16 %v2523_v37, %v2521_v31 }
 0x421   : > { %2524 = vpow2.f32 %v925_v38  ;;  %791 = vadd.xlane.f32.xlu0 %v790_v39  ;;  %1064 = vmatpush.bf16.msrb.mxu1 %v2298_v28  ;;  %v2122_v28 = vor.u32 %v2330_v18, %v2119_v27 }
 0x422   : > { %1974 = vmatmul.msk.bf16.vlgmr.msrb.gmra.mxu0 %vm700_vm9, %v793_v40 }
 0x424   : > { %v922_v41 = vpop.xlane.xlu0 %921 }
 0x425   : > { %v924_v42 = vsub.f32 %v916_v12, %v922_v41  ;;  %1065 = vmatpush.bf16.msrb.mxu1 %v2297_v29  ;;  %v2093_v29 = vld [vmem:[#allocation8 + $0xa0] sm:$0xf] }
 0x427   : > { %v2525_v44 = vpop.eup %2524  ;;  %v927_v45 = vmul.f32 1.442695, %v924_v42 }
 0x428   : > { %v929_v46 = vsel %vm700_vm9, %v2525_v44, 0.0 }
 0x429   : > { %2526 = vpow2.f32 %v927_v45  ;;  %930 = vadd.xlane.f32.xlu2 %v929_v46 }
 0x42f   : > { %v2527_v48 = vpop.eup %2526 }
 0x430   : > { %v932_v50 = vsel %vm700_vm9, %v2527_v48, 0.0  ;;  %v935_v55 = vpack.c.bf16 %v2527_v48, %v2525_v44 }
 0x431   : > { %717 = vadd.xlane.f32.xlu2 %v716_v49  ;;  %933 = vadd.xlane.f32.xlu0 %v932_v50 }
 0x434   : > { %v866_v51 = vpop.permute.xlu1 %865 }
 0x435   : > { %878 = vmatpush.bf16.msra.mxu2 %v866_v51 }
 0x437   : > { %v937_v53 = vpop.permute.xlu0 %936 }
 0x438   : > { %1976 = vmatmul.msk.bf16.vlgmr.msra.gmra.mxu2 %vm700_vm9, %v864_v52  ;;  %949 = vmatpush.bf16.msra.mxu0 %v937_v53 }
 0x43b   : > { %1978 = vmatmul.msk.bf16.vlgmr.msra.gmra.mxu0 %vm700_vm9, %v935_v55 }
 0x477   : > { %v860_v15 = vpop.xlane.xlu1 %859 }
 0x47f   : > { %v863_v56 = vpop.xlane.xlu2 %862  ;;  %v715_v30 = vpop.xlane.xlu1 %714 }
 0x48c   : > { %v789_v57 = vpop.xlane.xlu2 %788 }
 0x48d   : > { %2528 = vrcp.f32 %v789_v57 }
 0x493   : > { %v2529_v43 = vpop.eup %2528 }
 0x494   : > { %v792_v58 = vpop.xlane.xlu0 %791 }
 0x495   : > { %2530 = vrcp.f32 %v792_v58 }
 0x49b   : > { %v2531_v11 = vpop.eup %2530 }
 0x49c   : > { %v931_v3 = vpop.xlane.xlu2 %930 }
 0x49d   : > { %2532 = vrcp.f32 %v931_v3  ;;  %v2125_v3 = vld [vmem:[#allocation8 + $0xe0] sm:$0xf] }
 0x49f   : > { %v809_v60 = vpop.f32.mrf.mxu0 }
 0x4a0   : > { %v816_v62 = vmul.f32 %v2529_v43, %v809_v60 }
 0x4a3   : > { %v2533_v7 = vpop.eup %2532 }
 0x4a4   : > { %v934_v4 = vpop.xlane.xlu0 %933  ;;  %v718_v31 = vpop.xlane.xlu2 %717 }
 0x4a5   : > { %2534 = vrcp.f32 %v934_v4  ;;  %v2335_v4 = vld [vmem:[#allocation8 + $0xec] sm:$0xf0] }
 0x4a6   : > { %2536 = vrcp.f32 %v860_v15  ;;  %v2126_v15 = vor.u32 %v2335_v4, %v2125_v3  ;;  %v2071_v3 = vld [vmem:[#allocation8 + $0x78] sm:$0xf0] }
 0x4a7   : > { %v811_v61 = vpop.f32.mrf.mxu0  ;;  %2538 = vrcp.f32 %v863_v56 }
 0x4a8   : > { %v817_v63 = vmul.f32 %v2531_v11, %v811_v61  ;;  %2540 = vrcp.f32 %v715_v30  ;;  %1323 = vmatpush.bf16.msrb.mxu2 %v2126_v15  ;;  %v2327_v30 = vld [vmem:[#allocation8 + $0xac] sm:$0xf0] }
 0x4a9   : > { %2542 = vrcp.f32 %v718_v31  ;;  %v2325_v31 = vld [vmem:[#allocation8 + $0xa4] sm:$0xf]  ;;  %v2315_v15 = vld [vmem:[#allocation8 + $0x4c] sm:$0xf0] }
 0x4aa   : > { %v2491_v2 = vpack.i.bf16 %v817_v63, %v816_v62 }
 0x4ab   : > { %v2535_v9 = vpop.eup %2534 }
 0x4ac   : > { %2492 = vrot.lane.b32.xlu0 %v2491_v2, %s2856_s12  ;;  %v2537_v14 = vpop.eup %2536 }
 0x4ad   : > { %v2539_v16 = vpop.eup %2538 }
 0x4ae   : > { %v2541_v33 = vpop.eup %2540 }
 0x4af   : > { %v2543_v34 = vpop.eup %2542  ;;  %v745_v38 = vmul.f32 %v2541_v33, %v3117_v54  ;;  %v1009_v54 = vperm.slane %v3071_v47, 2  ;;  %v2095_v33 = vld [vmem:[#allocation8 + $0xb0] sm:$0xf0] }
 0x4b0   : > { %v746_v39 = vmul.f32 %v2543_v34, %v3122_v59  ;;  %v2101_v34 = vld [vmem:[#allocation8 + $0xa8] sm:$0xf] }
 0x4b8   : > { %v951_v5 = vpop.f32.mrf.mxu0 }
 0x4b9   : > { %v958_v12 = vmul.f32 %v2533_v7, %v951_v5  ;;  %v2333_v5 = vld [vmem:[#allocation8 + $0xe4] sm:$0xf]  ;;  %v2133_v7 = vld [vmem:[#allocation8 + $0xe8] sm:$0xf] }
 0x4bb   : > { %v880_v6 = vpop.f32.mrf.mxu2 }
 0x4bc   : > { %v887_v20 = vmul.f32 %v2537_v14, %v880_v6  ;;  %v2127_v6 = vld [vmem:[#allocation8 + $0xf0] sm:$0xf0]  ;;  %v2135_v14 = vld [vmem:[#allocation8 + $0xf8] sm:$0xf0] }
 0x4c0   : > { %v953_v10 = vpop.f32.mrf.mxu0 }
 0x4c1   : > { %v959_v13 = vmul.f32 %v2535_v9, %v953_v10  ;;  %v2336_v9 = vld [vmem:[#allocation8 + $0xf4] sm:$0xf0]  ;;  %v2130_v10 = vor.u32 %v2333_v5, %v2127_v6  ;;  %v2045_v5 = vld [vmem:[#allocation8 + $0x40] sm:$0xf]  ;;  %v2313_v6 = vld [vmem:[#allocation8 + $0x44] sm:$0xf] }
 0x4c3   : > { %v2501_v17 = vpack.i.bf16 %v959_v13, %v958_v12  ;;  %v882_v19 = vpop.f32.mrf.mxu2  ;;  %v2134_v12 = vor.u32 %v2336_v9, %v2133_v7  ;;  %v2334_v13 = vld [vmem:[#allocation8 + $0xec] sm:$0xf]  ;;  %1337 = vmatpush.bf16.msra.mxu3 %v2130_v10  ;;  %v2046_v7 = vor.u32 %v2315_v15, %v2045_v5  ;;  %v2047_v9 = vld [vmem:[#allocation8 + $0x50] sm:$0xf0]  ;;  %v2053_v10 = vld [vmem:[#allocation8 + $0x48] sm:$0xf] }
 0x4c4   : > { %v888_v21 = vmul.f32 %v2539_v16, %v882_v19  ;;  %v2138_v16 = vor.u32 %v2334_v13, %v2135_v14  ;;  %v2331_v19 = vld [vmem:[#allocation8 + $0xcc] sm:$0xf0]  ;;  %v2050_v13 = vor.u32 %v2313_v6, %v2047_v9  ;;  %v2357_v5 = vld [vmem:[#allocation10 + $0xa0] sm:$0xff] }
 0x4c5   : > { %2502 = vrot.lane.b32.xlu2 %v2501_v17, %s2855_s15  ;;  %1351 = vmatpush.bf16.msrb.mxu0 %v2134_v12  ;;  %v2109_v17 = vld [vmem:[#allocation8 + $0xc0] sm:$0xf]  ;;  %v2316_v12 = vld [vmem:[#allocation8 + $0x54] sm:$0xf0] }
 0x4c6   : > { %v2496_v22 = vpack.i.bf16 %v888_v21, %v887_v20  ;;  %v2329_v20 = vld [vmem:[#allocation8 + $0xc4] sm:$0xf]  ;;  %1365 = vmatpush.bf16.msra.mxu1 %v2138_v16  ;;  %v2110_v21 = vor.u32 %v2331_v19, %v2109_v17  ;;  %v2054_v14 = vor.u32 %v2316_v12, %v2053_v10  ;;  %v2314_v16 = vld [vmem:[#allocation8 + $0x4c] sm:$0xf]  ;;  %v2055_v17 = vld [vmem:[#allocation8 + $0x58] sm:$0xf0] }
 0x4c7   : > { %v2058_v19 = vor.u32 %v2314_v16, %v2055_v17  ;;  %v2365_v15 = vld [vmem:[#allocation10 + $0xe0] sm:$0xff]  ;;  %v1114_v17 = vperm.slane %v3071_v47, 3 }
 0x4c8   : > { %2497 = vrot.lane.b32.xlu1 %v2496_v22, %s2854_s9  ;;  %v2111_v22 = vld [vmem:[#allocation8 + $0xd0] sm:$0xf0]  ;;  %1324 = vmatpush.bf16.msrb.mxu2 %v2110_v21  ;;  %v2311_v21 = vld [vmem:[#allocation8 + $0x2c] sm:$0xf0] }
 0x4c9   : > { %v2114_v25 = vor.u32 %v2329_v20, %v2111_v22  ;;  %1352 = vmatpush.bf16.msrb.mxu0 %v2118_v26  ;;  %v2029_v20 = vld [vmem:[#allocation8 + $0x20] sm:$0xf]  ;;  %v2309_v22 = vld [vmem:[#allocation8 + $0x24] sm:$0xf]  ;;  %v2312_v26 = vld [vmem:[#allocation8 + $0x34] sm:$0xf0] }
 0x4ca   : > { %1366 = vmatpush.bf16.msra.mxu1 %v2122_v28  ;;  %v2030_v23 = vor.u32 %v2311_v21, %v2029_v20  ;;  %v2034_v27 = vor.u32 %v2309_v22, %v2031_v24 }
 0x4cb   : > { %1338 = vmatpush.bf16.msra.mxu3 %v2114_v25  ;;  %v2037_v25 = vld [vmem:[#allocation8 + $0x28] sm:$0xf] }
 0x4cc   : > { %v2038_v28 = vor.u32 %v2312_v26, %v2037_v25 }
 0x51e   : > { %v2493_v32 = vpop.permute.xlu0 %2492 }
 0x51f   : > { %v2495_v35 = vunpack.i.h.bf16 %v2493_v32  ;;  %v2494_v36 = vunpack.i.l.bf16 %v2493_v32  ;;  %v2503_v37 = vpop.permute.xlu2 %2502  ;;  %v2094_v32 = vor.u32 %v2327_v30, %v2093_v29  ;;  %v2310_v29 = vld [vmem:[#allocation8 + $0x2c] sm:$0xf]  ;;  %v2039_v30 = vld [vmem:[#allocation8 + $0x38] sm:$0xf0] }
 0x520   : > { %v2505_v46 = vunpack.i.h.bf16 %v2503_v37  ;;  %v2504_v48 = vunpack.i.l.bf16 %v2503_v37 }
 0x521   : > { %v984_v44 = vsel %vm675_vm7, %v745_v38, %v2494_v36  ;;  %v985_v45 = vsel %vm675_vm7, %v746_v39, %v2495_v35  ;;  %v2328_v35 = vld [vmem:[#allocation8 + $0xb4] sm:$0xf0]  ;;  %v2098_v36 = vor.u32 %v2325_v31, %v2095_v33  ;;  %v2326_v38 = vld [vmem:[#allocation8 + $0xac] sm:$0xf]  ;;  %v2103_v39 = vld [vmem:[#allocation8 + $0xb8] sm:$0xf0]  ;;  %1325 = vmatpush.bf16.msrb.mxu2 %v2094_v32  ;;  %v2042_v33 = vor.u32 %v2310_v29, %v2039_v30 }
 0x522   : > { %v2102_v37 = vor.u32 %v2328_v35, %v2101_v34  ;;  %v2013_v31 = vld [vmem:[#allocation8] sm:$0xf]  ;;  %v2307_v34 = vld [vmem:[#allocation8 + $0xc] sm:$0xf0]  ;;  %v2305_v35 = vld [vmem:[#allocation8 + $0x4] sm:$0xf] }
 0x523   : > { %1339 = vmatpush.bf16.msra.mxu3 %v2098_v36  ;;  %v2015_v36 = vld [vmem:[#allocation8 + $0x10] sm:$0xf0]  ;;  %v2349_v29 = vld [vmem:[#allocation10 + $0x60] sm:$0xff] }
 0x524   : > { %1353 = vmatpush.bf16.msrb.mxu0 %v2102_v37  ;;  %v2014_v37 = vor.u32 %v2307_v34, %v2013_v31  ;;  %v2363_v30 = vld [vmem:[#allocation10 + $0xd0] sm:$0xff]  ;;  %v2348_v31 = vld [vmem:[#allocation10 + $0x58] sm:$0xff] }
 0x525   : > { %v2339_v34 = vld [vmem:[#allocation10 + $0x10] sm:$0xff] }
 0x53a   : > { %v2498_v40 = vpop.permute.xlu1 %2497 }
 0x53b   : > { %v2500_v41 = vunpack.i.h.bf16 %v2498_v40  ;;  %v2499_v42 = vunpack.i.l.bf16 %v2498_v40  ;;  %v2106_v40 = vor.u32 %v2326_v38, %v2103_v39  ;;  %v2018_v38 = vor.u32 %v2305_v35, %v2015_v36  ;;  %v2021_v39 = vld [vmem:[#allocation8 + $0x8] sm:$0xf]  ;;  %v2347_v35 = vld [vmem:[#allocation10 + $0x50] sm:$0xff]  ;;  %v2353_v36 = vld [vmem:[#allocation10 + $0x80] sm:$0xff] }
 0x53d   : > { %v987_v49 = vsel %vm986_vm11, %v984_v44, %v2499_v42  ;;  %v988_v50 = vsel %vm986_vm11, %v985_v45, %v2500_v41  ;;  %v2077_v41 = vld [vmem:[#allocation8 + $0x80] sm:$0xf]  ;;  %v2323_v42 = vld [vmem:[#allocation8 + $0x8c] sm:$0xf0]  ;;  %v2321_v44 = vld [vmem:[#allocation8 + $0x84] sm:$0xf]  ;;  %1367 = vmatpush.bf16.msra.mxu1 %v2106_v40 }
 0x53e   : > { %v990_v51 = vsel %vm989_vm12, %v987_v49, %v2504_v48  ;;  %v991_v52 = vsel %vm989_vm12, %v988_v50, %v2505_v46  ;;  %v2078_v45 = vor.u32 %v2323_v42, %v2077_v41  ;;  %v2079_v46 = vld [vmem:[#allocation8 + $0x90] sm:$0xf0]  ;;  %v2085_v48 = vld [vmem:[#allocation8 + $0x88] sm:$0xf]  ;;  %v2324_v49 = vld [vmem:[#allocation8 + $0x94] sm:$0xf0] }
 0x53f   : > { %v992_v53 = vpack.c.bf16 %v991_v52, %v990_v51  ;;  %v2082_v50 = vor.u32 %v2321_v44, %v2079_v46  ;;  %v2086_v51 = vor.u32 %v2324_v49, %v2085_v48  ;;  %v2322_v52 = vld [vmem:[#allocation8 + $0x8c] sm:$0xf]  ;;  %v2308_v40 = vld [vmem:[#allocation8 + $0x14] sm:$0xf0] }
 0x540   : > { %1326 = vmatpush.bf16.msrb.mxu2 %v2078_v45  ;;  %v2306_v41 = vld [vmem:[#allocation8 + $0xc] sm:$0xf]  ;;  %v2022_v44 = vor.u32 %v2308_v40, %v2021_v39  ;;  %v2023_v45 = vld [vmem:[#allocation8 + $0x18] sm:$0xf0]  ;;  %v2337_v40 = vld [vmem:[#allocation10] sm:$0xff] }
 0x541   : > { %1066 = vmatmul.bf16.vlgmr.msrb.gmra.mxu1 %v992_v53  ;;  %v2087_v53 = vld [vmem:[#allocation8 + $0x98] sm:$0xf0]  ;;  %1340 = vmatpush.bf16.msra.mxu3 %v2082_v50  ;;  %v2026_v46 = vor.u32 %v2306_v41, %v2023_v45  ;;  %v2346_v39 = vld [vmem:[#allocation10 + $0x48] sm:$0xff]  ;;  %v2345_v41 = vld [vmem:[#allocation10 + $0x40] sm:$0xff] }
 0x542   : > { %1354 = vmatpush.bf16.msrb.mxu0 %v2086_v51  ;;  %v2360_v49 = vld [vmem:[#allocation10 + $0xb8] sm:$0xff] }
 0x543   : > { %v2368_v50 = vld [vmem:[#allocation10 + $0xf8] sm:$0xff] }
 0x5be   : > { %v1067_v59 = vpop.f32.mrf.mxu1 }
 0x5bf   : > { %v1068_v55 = vadd.f32 %v1067_v59, %v1009_v54  ;;  %v2061_v59 = vld [vmem:[#allocation8 + $0x60] sm:$0xf] }
 0x5c1   : > { %v3165_v56 = vadd.f32 %v1068_v55, %v3049_v0  ;;  %v2319_v55 = vld [vmem:[#allocation8 + $0x6c] sm:$0xf0] }
 0x5c3   : > { %1074 = vadd.xlane.f32.xlu0 %v3165_v56 }
 0x5c6   : > { %v1069_v57 = vpop.f32.mrf.mxu1 }
 0x5c7   : > { %v1070_v58 = vadd.f32 %v1069_v57, %v1009_v54  ;;  %v2090_v54 = vor.u32 %v2322_v52, %v2087_v53  ;;  %v2317_v57 = vld [vmem:[#allocation8 + $0x64] sm:$0xf]  ;;  %v2344_v52 = vld [vmem:[#allocation10 + $0x38] sm:$0xff] }
 0x5c8   : > { %v2352_v53 = vld [vmem:[#allocation10 + $0x78] sm:$0xff] }
 0x5c9   : > { %v3169_v60 = vadd.f32 %v1070_v58, %v3052_v1  ;;  %1368 = vmatpush.bf16.msra.mxu1 %v2090_v54  ;;  %v2062_v58 = vor.u32 %v2319_v55, %v2061_v59  ;;  %v2359_v54 = vld [vmem:[#allocation10 + $0xb0] sm:$0xff] }
 0x5ca   : > { %v2367_v59 = vld [vmem:[#allocation10 + $0xf0] sm:$0xff] }
 0x5cb   : > { %1076 = vadd.xlane.f32.xlu1 %v3169_v60  ;;  %1327 = vmatpush.bf16.msrb.mxu2 %v2062_v58  ;;  %v2343_v58 = vld [vmem:[#allocation10 + $0x30] sm:$0xff] }
 0x5cf   : > { %1328 = vmatpush.bf16.msrb.mxu2 %v2046_v7 }
 0x5d3   : > { %1329 = vmatpush.bf16.msrb.mxu2 %v2030_v23  ;;  %v1117_v23 = vperm.slane %v3071_v47, 4  ;;  %v2340_v47 = vld [vmem:[#allocation10 + $0x18] sm:$0xff] }
 0x5d7   : > { %1330 = vmatpush.bf16.msrb.mxu2 %v2014_v37  ;;  %v2361_v37 = vld [vmem:[#allocation10 + $0xc0] sm:$0xff] }
 0x5db   : > { %1648 = vmatpush.bf16.msra.mxu2 %v2344_v52 }
 0x5df   : > { %1649 = vmatpush.bf16.msra.mxu2 %v2343_v58 }
 0x636   : > { %v1075_v43 = vpop.xlane.xlu0 %1074 }
 0x637   : > { %v1078_v11 = vmul.f32 %v1075_v43, %v3055_v8  ;;  %v2063_v43 = vld [vmem:[#allocation8 + $0x70] sm:$0xf0] }
 0x639   : > { %v3174_v61 = vsub.f32 %v3165_v56, %v1078_v11  ;;  %v2069_v11 = vld [vmem:[#allocation8 + $0x68] sm:$0xf] }
 0x63b   : > { %v1082_v62 = vmul.f32 %v3174_v61, %v3174_v61 }
 0x63d   : > { %1084 = vadd.xlane.f32.xlu2 %v1082_v62  ;;  %v2320_v62 = vld [vmem:[#allocation8 + $0x74] sm:$0xf0] }
 0x63e   : > { %v1077_v0 = vpop.xlane.xlu1 %1076 }
 0x63f   : > { %v1079_v63 = vmul.f32 %v1077_v0, %v3055_v8  ;;  %v2066_v0 = vor.u32 %v2317_v57, %v2063_v43  ;;  %v2351_v43 = vld [vmem:[#allocation10 + $0x70] sm:$0xff] }
 0x641   : > { %v3180_v2 = vsub.f32 %v3169_v60, %v1079_v63  ;;  %v2070_v63 = vor.u32 %v2320_v62, %v2069_v11  ;;  %1341 = vmatpush.bf16.msra.mxu3 %v2066_v0  ;;  %v2358_v0 = vld [vmem:[#allocation10 + $0xa8] sm:$0xff] }
 0x643   : > { %v1083_v1 = vmul.f32 %v3180_v2, %v3180_v2  ;;  %1355 = vmatpush.bf16.msrb.mxu0 %v2070_v63  ;;  %v2366_v63 = vld [vmem:[#allocation10 + $0xe8] sm:$0xff] }
 0x645   : > { %1086 = vadd.xlane.f32.xlu0 %v1083_v1  ;;  %v2318_v1 = vld [vmem:[#allocation8 + $0x6c] sm:$0xf]  ;;  %1342 = vmatpush.bf16.msra.mxu3 %v2050_v13 }
 0x646   : > { %v2074_v4 = vor.u32 %v2318_v1, %v2071_v3  ;;  %v2350_v1 = vld [vmem:[#allocation10 + $0x68] sm:$0xff] }
 0x647   : > { %1356 = vmatpush.bf16.msrb.mxu0 %v2054_v14 }
 0x648   : > { %1369 = vmatpush.bf16.msra.mxu1 %v2074_v4 }
 0x649   : > { %1343 = vmatpush.bf16.msra.mxu3 %v2034_v27  ;;  %v2364_v27 = vld [vmem:[#allocation10 + $0xd8] sm:$0xff] }
 0x64b   : > { %1357 = vmatpush.bf16.msrb.mxu0 %v2038_v28  ;;  %v2341_v28 = vld [vmem:[#allocation10 + $0x20] sm:$0xff] }
 0x64c   : > { %1370 = vmatpush.bf16.msra.mxu1 %v2058_v19 }
 0x64d   : > { %1344 = vmatpush.bf16.msra.mxu3 %v2018_v38  ;;  %v2338_v38 = vld [vmem:[#allocation10 + $0x8] sm:$0xff] }
 0x64f   : > { %1358 = vmatpush.bf16.msrb.mxu0 %v2022_v44 }
 0x650   : > { %1371 = vmatpush.bf16.msra.mxu1 %v2042_v33  ;;  %v2362_v33 = vld [vmem:[#allocation10 + $0xc8] sm:$0xff] }
 0x651   : > { %1662 = vmatpush.bf16.msrb.mxu3 %v2352_v53 }
 0x653   : > { %1676 = vmatpush.bf16.msra.mxu0 %v2360_v49 }
 0x654   : > { %1372 = vmatpush.bf16.msra.mxu1 %v2026_v46 }
 0x655   : > { %1663 = vmatpush.bf16.msrb.mxu3 %v2351_v43 }
 0x657   : > { %1677 = vmatpush.bf16.msra.mxu0 %v2359_v54 }
 0x658   : > { %1690 = vmatpush.bf16.msrb.mxu1 %v2368_v50 }
 0x659   : > { %1664 = vmatpush.bf16.msrb.mxu3 %v2350_v1 }
 0x65b   : > { %1678 = vmatpush.bf16.msra.mxu0 %v2358_v0 }
 0x65c   : > { %1691 = vmatpush.bf16.msrb.mxu1 %v2367_v59 }
 0x65d   : > { %1665 = vmatpush.bf16.msrb.mxu3 %v2349_v29 }
 0x65f   : > { %1679 = vmatpush.bf16.msra.mxu0 %v2357_v5 }
 0x660   : > { %1692 = vmatpush.bf16.msrb.mxu1 %v2366_v63 }
 0x661   : > { %1666 = vmatpush.bf16.msrb.mxu3 %v2348_v31 }
 0x664   : > { %1693 = vmatpush.bf16.msrb.mxu1 %v2365_v15 }
 0x665   : > { %1667 = vmatpush.bf16.msrb.mxu3 %v2347_v35 }
 0x668   : > { %1694 = vmatpush.bf16.msrb.mxu1 %v2364_v27 }
 0x669   : > { %1668 = vmatpush.bf16.msrb.mxu3 %v2346_v39 }
 0x66c   : > { %1695 = vmatpush.bf16.msrb.mxu1 %v2363_v30 }
 0x66d   : > { %1669 = vmatpush.bf16.msrb.mxu3 %v2345_v41 }
 0x670   : > { %1696 = vmatpush.bf16.msrb.mxu1 %v2362_v33 }
 0x674   : > { %1697 = vmatpush.bf16.msrb.mxu1 %v2361_v37 }
 0x6b0   : > { %v1085_v18 = vpop.xlane.xlu2 %1084 }
 0x6b1   : > { %v1088_v32 = vmul.f32 %v1085_v18, %v3055_v8 }
 0x6b3   : > { %v1090_v42 = vadd.f32 1e-05, %v1088_v32  ;;  %v2354_v32 = vld [vmem:[#allocation10 + $0x88] sm:$0xff] }
 0x6b5   : > { %2544 = vrsqrt.f32 %v1090_v42  ;;  %vm1098_vm14 = vweird.f32 %v1090_v42 }
 0x6b8   : > { %v1087_v48 = vpop.xlane.xlu0 %1086 }
 0x6b9   : > { %v1089_v51 = vmul.f32 %v1087_v48, %v3055_v8  ;;  %v2342_v8 = vld [vmem:[#allocation10 + $0x28] sm:$0xff] }
 0x6ba   : > { %1650 = vmatpush.bf16.msra.mxu2 %v2342_v8 }
 0x6bb   : > { %v2545_v55 = vpop.eup %2544  ;;  %v1091_v57 = vadd.f32 1e-05, %v1089_v51 }
 0x6bc   : > { %v1093_v11 = vmul.f32 %v2545_v55, %v1090_v42  ;;  %vm1099_vm13 = vweird.f32 %v2545_v55  ;;  %v1153_v42 = vld [vmem:[#allocation13] sm:$0xf] }
 0x6bd   : > { %2546 = vrsqrt.f32 %v1091_v57  ;;  %vm1100_vm15 = vmor %vm1098_vm14, %vm1099_vm13  ;;  %vm1108_vm1 = vweird.f32 %v1091_v57  ;;  %v1157_v46 = vperm.slane %v1153_v42, 2  ;;  %v1158_v48 = vperm.slane %v1153_v42, 3 }
 0x6be   : > { %v1094_v62 = vmul.f32 %v2545_v55, %v1093_v11  ;;  %1651 = vmatpush.bf16.msra.mxu2 %v2341_v28  ;;  %v1155_v53 = vperm.slane %v1153_v42, 0  ;;  %v1156_v54 = vperm.slane %v1153_v42, 1 }
 0x6c0   : > { %v1095_v3 = vmul.f32 0.5, %v1094_v62 }
 0x6c2   : > { %v1096_v4 = vsub.f32 1.5, %v1095_v3  ;;  %1652 = vmatpush.bf16.msra.mxu2 %v2340_v47 }
 0x6c3   : > { %v2547_v6 = vpop.eup %2546 }
 0x6c4   : > { %v1097_v7 = vmul.f32 %v2545_v55, %v1096_v4  ;;  %v1103_v9 = vmul.f32 %v2547_v6, %v1091_v57  ;;  %vm1109_vm0 = vweird.f32 %v2547_v6 }
 0x6c5   : > { %vm1110_vm2 = vmor %vm1108_vm1, %vm1109_vm0 }
 0x6c6   : > { %v1104_v10 = vmul.f32 %v2547_v6, %v1103_v9  ;;  %v1101_v12 = vsel %vm1100_vm15, %v2545_v55, %v1097_v7  ;;  %1653 = vmatpush.bf16.msra.mxu2 %v2339_v34 }
 0x6c7   : > { %v1112_v16 = vmul.f32 %v1101_v12, %v3174_v61  ;;  %v2356_v61 = vld [vmem:[#allocation10 + $0x98] sm:$0xff] }
 0x6c8   : > { %v1105_v13 = vmul.f32 0.5, %v1104_v10  ;;  %1680 = vmatpush.bf16.msra.mxu0 %v2356_v61 }
 0x6c9   : > { %v1115_v22 = vmul.f32 %v1114_v17, %v1112_v16  ;;  %v2548_v16 = vld [vmem:[#allocation11] sm:$0xff] }
 0x6ca   : > { %v1106_v14 = vsub.f32 1.5, %v1105_v13  ;;  %1654 = vmatpush.bf16.msra.mxu2 %v2338_v38 }
 0x6cb   : > { %v1118_v25 = vadd.f32 %v1117_v23, %v1115_v22 }
 0x6cc   : > { %v1107_v19 = vmul.f32 %v2547_v6, %v1106_v14 }
 0x6ce   : > { %v1111_v20 = vsel %vm1110_vm2, %v2547_v6, %v1107_v19  ;;  %1655 = vmatpush.bf16.msra.mxu2 %v2337_v40 }
 0x6cf   : > { %v1113_v21 = vmul.f32 %v1111_v20, %v3180_v2  ;;  %v2355_v2 = vld [vmem:[#allocation10 + $0x90] sm:$0xff] }
 0x6d0   : > { %1681 = vmatpush.bf16.msra.mxu0 %v2355_v2 }
 0x6d1   : > { %v1116_v24 = vmul.f32 %v1114_v17, %v1113_v21  ;;  %v1455_v17 = vperm.slane %v2548_v16, 5 }
 0x6d3   : > { %v1119_v26 = vadd.f32 %v1117_v23, %v1116_v24 }
 0x6d4   : > { %1682 = vmatpush.bf16.msra.mxu0 %v2354_v32 }
 0x6d5   : > { %v1120_v18 = vpack.c.bf16 %v1119_v26, %v1118_v25 }
 0x6d7   : > { %1331 = vmatmul.bf16.vlgmr.msrb.gmra.mxu2 %v1120_v18  ;;  %1345 = vmatmul.bf16.vlgmr.msra.gmra.mxu3 %v1120_v18 }
 0x6d8   : > { %1359 = vmatmul.bf16.vlgmr.msrb.gmra.mxu0 %v1120_v18  ;;  %1373 = vmatmul.bf16.vlgmr.msra.gmra.mxu1 %v1120_v18 }
 0x6d9   : > { %1683 = vmatpush.bf16.msra.mxu0 %v2353_v36 }
 0x755   : > { %v1360_v44 = vpop.f32.mrf.mxu0  ;;  %v1374_v45 = vpop.f32.mrf.mxu1 }
 0x756   : > { %v1361_v51 = vadd.f32 %v1360_v44, %v1157_v46  ;;  %v1375_v52 = vadd.f32 %v1374_v45, %v1158_v48 }
 0x758   : > { %v1381_v43 = vmax.f32 %v1361_v51, 0.0  ;;  %v1382_v11 = vmax.f32 %v1375_v52, 0.0 }
 0x75a   : > { %v1332_v49 = vpop.f32.mrf.mxu2  ;;  %v1346_v50 = vpop.f32.mrf.mxu3 }
 0x75b   : > { %v1333_v63 = vadd.f32 %v1332_v49, %v1155_v53  ;;  %v1347_v8 = vadd.f32 %v1346_v50, %v1156_v54 }
 0x75d   : > { %v1362_v59 = vpop.f32.mrf.mxu0  ;;  %v1376_v55 = vpop.f32.mrf.mxu1  ;;  %v1379_v7 = vmax.f32 %v1333_v63, 0.0  ;;  %v1380_v9 = vmax.f32 %v1347_v8, 0.0 }
 0x75e   : > { %v1363_v57 = vadd.f32 %v1362_v59, %v1157_v46  ;;  %v1377_v58 = vadd.f32 %v1376_v55, %v1158_v48 }
 0x760   : > { %v1385_v62 = vmax.f32 %v1363_v57, 0.0  ;;  %v1386_v0 = vmax.f32 %v1377_v58, 0.0 }
 0x762   : > { %v1389_v1 = vpack.c.bf16 %v1385_v62, %v1381_v43  ;;  %v1390_v3 = vpack.c.bf16 %v1386_v0, %v1382_v11  ;;  %v1334_v4 = vpop.f32.mrf.mxu2  ;;  %v1348_v5 = vpop.f32.mrf.mxu3 }
 0x763   : > { %v1335_v15 = vadd.f32 %v1334_v4, %v1155_v53  ;;  %v1349_v6 = vadd.f32 %v1348_v5, %v1156_v54 }
 0x764   : > { %1684 = vmatmul.bf16.vlgmr.msra.gmra.mxu0 %v1389_v1  ;;  %1698 = vmatmul.bf16.vlgmr.msrb.gmra.mxu1 %v1390_v3 }
 0x765   : > { %v1383_v10 = vmax.f32 %v1335_v15, 0.0  ;;  %v1384_v12 = vmax.f32 %v1349_v6, 0.0 }
 0x767   : > { %v1387_v13 = vpack.c.bf16 %v1383_v10, %v1379_v7  ;;  %v1388_v14 = vpack.c.bf16 %v1384_v12, %v1380_v9 }
 0x769   : > { %1656 = vmatmul.bf16.vlgmr.msra.gmra.mxu2 %v1387_v13  ;;  %1670 = vmatmul.bf16.vlgmr.msrb.gmra.mxu3 %v1388_v14 }
 0x7e1   : > { %v1685_v22 = vpop.f32.mrf.mxu0  ;;  %v1699_v24 = vpop.f32.mrf.mxu1 }
 0x7e9   : > { %v1687_v2 = vpop.f32.mrf.mxu0  ;;  %v1701_v47 = vpop.f32.mrf.mxu1 }
 0x7ec   : > { %v1657_v19 = vpop.f32.mrf.mxu2  ;;  %v1671_v20 = vpop.f32.mrf.mxu3 }
 0x7ed   : > { %v1658_v21 = vadd.f32 %v1657_v19, %v1455_v17 }
 0x7ef   : > { %v1672_v23 = vadd.f32 %v1671_v20, %v1658_v21 }
 0x7f1   : > { %v1686_v25 = vadd.f32 %v1685_v22, %v1672_v23 }
 0x7f3   : > { %v1700_v26 = vadd.f32 %v1699_v24, %v1686_v25 }
 0x7f4   : > { %v1659_v18 = vpop.f32.mrf.mxu2  ;;  %v1673_v28 = vpop.f32.mrf.mxu3 }
 0x7f5   : > { %v1704_v61 = vadd.f32 %v1700_v26, %v3165_v56  ;;  %v1660_v27 = vadd.f32 %v1659_v18, %v1455_v17 }
 0x7f7   : > { %1706 = vst [vmem:[%s393_s13] sm:$0xff] %v1704_v61  ;;  %v1674_v29 = vadd.f32 %v1673_v28, %v1660_v27 }
 0x7f9   : > { %v1688_v30 = vadd.f32 %v1687_v2, %v1674_v29 }
 0x7fb   : > { %v1702_v31 = vadd.f32 %v1701_v47, %v1688_v30 }
 0x7fd   : > { %v1705_v56 = vadd.f32 %v1702_v31, %v3169_v60 }
 0x7ff   : > { %1707 = vst [vmem:[%s393_s13 + $0x8] sm:$0xff] %v1705_v56 }
 0x800   : > { %2786 = shalt.err (!%p2783_p9)
}
 0x801   : > { %s2857_s10 = smov 128   ;;  %s2858_s12 = smov 8  }
 0x802   : > { %2396 = dma.vmem_to_hbm [thread:$0]  (%p2996_p4), %s1722_s28, 256, %s1724_s17, %s1709_s8, %s2857_s10, %s2857_s10, %s2858_s12  }
 0x803 PF: > { %s1738_s30 = sand.u32 1, %s2825_s24   ;;  %p3246_p10 = scmp.ge.s32.totalorder %s2837_s27, 2 }
 0x804   : > { %s1739_s13 = scalar_lea.sflag [#allocation4], %s1738_s30 }
 0x805   : > { %p2422_p13 = pnand %p3246_p10, %p3000_p6 }
 0x807   : > { %p2423_p11 = pneg %p2422_p13 }
 0x809   : > { %2820 = dma.done.wait (%p2423_p11), %s1739_s13, 256  }
 0x80a   : > { %2822 = vsyncadd (%p2423_p11), %s1739_s13, 4294967040  ;;  %p23_p0 = scmp.ge.s32.totalorder %s2970_s16, 4   ;;  %s3247_s24 = smov %s2829_s25 }
 0x80b   : > { %s3248_s25 = smov %s2833_s26  ;;  %s3249_s26 = smov %s2981_s14 }
 0x80c   : > { %s3250_s27 = smov %s2970_s16  ;;  %25 = sbr.rel (!%p23_p0) target bundleno = 11 (0xb), region = 117 }
 0x811   :  { %1745 = vsyncpa [#allocation3], 1 }
 0x812   :  { %1747 = vsyncpa [#allocation3 + $0x1], 1 }
 0x813   :  { %1748 = vsyncpa [#allocation6], 1 }
 0x814   :  { %1749 = vsyncpa [#allocation9], 1 }
 0x815   :  { %1750 = vsyncpa [#allocation12], 1 }
 0x816   :  { %1751 = vsyncpa [#allocation4], 1 }
 0x817   :  { %1753 = vsyncpa [#allocation4 + $0x1], 1 }

</bundles_post_ra>
